<compile_context>
chip_gen: v7x
topology: tpu7x:2x2x1
jax: 0.10.0
libtpu: 0.0.40
codegen_flags: <defaults>
</compile_context>

<pallas_src>
import jax
import jax.numpy as jnp
from jax import lax
from jax.experimental import pallas as pl
from jax.experimental.pallas import tpu as pltpu

EPS = 1e-5
HIDDEN = 16  # finput_layer_sizes[-1] == GRU hidden size == padded feature width


def market_predictor_kernel(x_ref, wlin_ref, wgru_ref, bnv_ref, bgru_ref, out_ref):
    """Whole forward pass; all activations live in vregs/VMEM values.

    x_ref    : (T*B, 16)  time-major input, channels zero-padded to 16 lanes
    wlin_ref : (6, 16, 16) Linear weights (in,out layout), zero-padded
    wgru_ref : (2, 16, 48) [W_i; W_h] fused GRU gate weights (r|z|n)
    bnv_ref  : (6, 3, 16)  per Linear layer [bias, gamma, beta], zero-padded
    bgru_ref : (2, 48)     row0 = b_i + [b_h(r), b_h(z), 0]; row1 = [b_h(n), 0, 0]
    out_ref  : (B, 16)     col 0 = mean, col 1 = scale, cols 2..15 = 0
    """
    TB = x_ref.shape[0]
    B = out_ref.shape[0]
    T = TB // B
    H = HIDDEN

    def linear_bn(h, k, relu=True):
        # Linear -> BatchNorm1d (batch stats, biased var) -> optional ReLU.
        # Zero-padded lanes self-propagate as zeros ONLY because gamma/beta/bias
        # are zero-padded (padding gamma with 1 would leak rsqrt(eps) garbage).
        w = wlin_ref[k]                      # (16, 16)
        v = bnv_ref[k]                       # (3, 16): bias / gamma / beta
        y = jnp.dot(h, w, preferred_element_type=jnp.float32) + v[0:1, :]
        inv_n = 1.0 / y.shape[0]
        # Two independent reductions (no mu -> var serial dependency).
        mu = jnp.sum(y, axis=0, keepdims=True) * inv_n
        ey2 = jnp.sum(y * y, axis=0, keepdims=True) * inv_n
        var = ey2 - mu * mu
        scale = v[1:2, :] * lax.rsqrt(var + EPS)   # gamma / sqrt(var+eps)
        shift = v[2:3, :] - mu * scale             # beta - mu*scale
        y = y * scale + shift
        return jnp.maximum(y, 0.0) if relu else y

    # ---- finput on all T*B rows at once (BN stats are row-order invariant) ----
    h = x_ref[...].astype(jnp.float32)
    h = linear_bn(h, 0)
    h = linear_bn(h, 1)
    h = linear_bn(h, 2)                      # (T*B, 16)

    # ---- GRU: input-path gates hoisted out of the recurrence ----
    wi = wgru_ref[0]                         # (16, 48)
    wh = wgru_ref[1]                         # (16, 48)
    bg = bgru_ref[...]                       # (2, 48)
    # b_h(r), b_h(z) already folded into bg[0]; only b_h(n) stays in-loop.
    xg = jnp.dot(h, wi, preferred_element_type=jnp.float32) + bg[0:1, :]  # (T*B,48)
    bhn = jnp.broadcast_to(bg[1:2, 0:H], (B, H))                          # hoisted

    # Pre-split the per-timestep gate values so the cross-sublane extracts sit
    # off the serial hidden-state chain (B=2 => slice starts are not 8-aligned).
    g_is = [xg[t * B:(t + 1) * B, :] for t in range(T)]

    # Fully unrolled recurrence (T is a static, tiny trip count): one small
    # matmul + one sigmoid + one tanh per step remain on the serial chain.
    # TODO(synk): evaluate pltpu.matmul_push_rhs/acc_lhs/pop to keep wh resident
    # in the MXU across steps instead of re-pushing it via jnp.dot each step.
    hidden = jnp.zeros((B, H), jnp.float32)
    for t in range(T):
        g_i = g_is[t]                                                    # (B, 48)
        g_h = jnp.dot(hidden, wh, preferred_element_type=jnp.float32)   # (B, 48)
        # Single EUP push for both r and z.
        sig = jax.nn.sigmoid(g_i[:, 0:2 * H] + g_h[:, 0:2 * H])
        r = sig[:, 0:H]
        z = sig[:, H:2 * H]
        n = jnp.tanh(g_i[:, 2 * H:3 * H] + r * (g_h[:, 2 * H:3 * H] + bhn))
        hidden = (1.0 - z) * n + z * hidden

    # ---- foutput on the final hidden state ----
    o = linear_bn(hidden, 3)
    o = linear_bn(o, 4)
    o = linear_bn(o, 5, relu=False)          # (B, 16); real data in cols 0..1

    # Normal(mean, |var|): lane-masked select, no 1-lane concatenation.
    col = lax.broadcasted_iota(jnp.int32, o.shape, 1)
    out_ref[...] = jnp.where(col == 1, jnp.abs(o), o)


def init_params(key, input_channels=4, hidden=HIDDEN):
    """Deterministic synthetic parameters matching the module's shapes (36 arrays)."""
    finput_sizes = [input_channels, 8, 16, 16]
    foutput_sizes = [16, 16, 8, 2]
    params = []
    keys = iter(jax.random.split(key, 64))

    def linear_bn_params(cin, cout):
        w = 0.2 * jax.random.normal(next(keys), (cin, cout), jnp.float32)
        b = 0.1 * jax.random.normal(next(keys), (1, cout), jnp.float32)
        g = 1.0 + 0.1 * jax.random.normal(next(keys), (1, cout), jnp.float32)
        be = 0.1 * jax.random.normal(next(keys), (1, cout), jnp.float32)
        return [w, b, g, be]

    # finput
    for cin, cout in zip(finput_sizes[:-1], finput_sizes[1:]):
        params += linear_bn_params(cin, cout)
    # GRUCell(hidden, hidden): 6 weight mats (in,out layout) + 6 biases (r,z,n order)
    gru_ws = [0.2 * jax.random.normal(next(keys), (hidden, hidden), jnp.float32)
              for _ in range(6)]
    gru_bs = [0.1 * jax.random.normal(next(keys), (1, hidden), jnp.float32)
              for _ in range(6)]
    params += gru_ws + gru_bs
    # foutput
    for cin, cout in zip(foutput_sizes[:-1], foutput_sizes[1:]):
        params += linear_bn_params(cin, cout)
    return params


def pack_params(params, hidden=HIDDEN):
    """Pack the 36 raw parameter arrays into 4 DMA-friendly slabs.

    Called ONCE at init (hoisted out of the per-call path); the forward is jitted
    over the returned slabs.
    """
    (w1, b1, g1, be1, w2, b2, g2, be2, w3, b3, g3, be3,
     wir, wiz, win, whr, whz, whn, bir, biz, bin_, bhr, bhz, bhn,
     w4, b4, g4, be4, w5, b5, g5, be5, w6, b6, g6, be6) = params

    def pad_w(w):
        cin, cout = w.shape
        return jnp.pad(w, ((0, hidden - cin), (0, hidden - cout)))

    def pad_v(v):
        return jnp.pad(v, ((0, 0), (0, hidden - v.shape[1])))

    wlin = jnp.stack([pad_w(w) for w in (w1, w2, w3, w4, w5, w6)])          # (6,16,16)
    wgru = jnp.stack([jnp.concatenate([wir, wiz, win], axis=1),
                      jnp.concatenate([whr, whz, whn], axis=1)])            # (2,16,48)
    bnv = jnp.stack([jnp.concatenate([pad_v(b), pad_v(g), pad_v(be)], axis=0)
                     for (b, g, be) in ((b1, g1, be1), (b2, g2, be2), (b3, g3, be3),
                                        (b4, g4, be4), (b5, g5, be5), (b6, g6, be6))])  # (6,3,16)
    # Fused GRU bias slab:
    #   row0 = b_i(r|z|n) + [b_h(r), b_h(z), 0]   (added once to the hoisted xg)
    #   row1 = [b_h(n), 0, 0]                     (16 lanes used inside r*(...))
    zeros_h = jnp.zeros((1, hidden), jnp.float32)
    row0 = (jnp.concatenate([bir, biz, bin_], axis=1)
            + jnp.concatenate([bhr, bhz, zeros_h], axis=1))
    row1 = jnp.concatenate([bhn, zeros_h, zeros_h], axis=1)
    bgru = jnp.concatenate([row0, row1], axis=0)                            # (2,48)
    return wlin, wgru, bnv, bgru


@jax.jit
def market_predictor(x, wlin, wgru, bnv, bgru):
    """Jitted forward over pre-packed slabs (parameter packing is init-time)."""
    B, T, C = x.shape
    hidden = HIDDEN
    # Layout plumbing stays in XLA: time-major flatten + zero-pad channels to 16.
    x_tm = jnp.transpose(x.astype(jnp.float32), (1, 0, 2)).reshape(T * B, C)
    x_tm = jnp.pad(x_tm, ((0, 0), (0, hidden - C)))

    out = pl.pallas_call(
        market_predictor_kernel,
        out_shape=jax.ShapeDtypeStruct((B, hidden), jnp.float32),
        in_specs=[pl.BlockSpec(memory_space=pltpu.MemorySpace.VMEM)] * 5,
        out_specs=pl.BlockSpec(memory_space=pltpu.MemorySpace.VMEM),
    )(x_tm, wlin, wgru, bnv, bgru)
    # TODO(synk): at production batch sizes, add a batch grid axis with
    # dimension_semantics=("parallel",) so v7x can shard across both TensorCores,
    # and make the output lane-dense (multiple of 128 lanes) to avoid vst.msk.
    mean = out[:, 0]
    scale = out[:, 1]
    return mean, scale  # parameters of Normal(mean, scale)


def _ref_forward(x, params):
    """Pure-JAX reference mirroring the PyTorch forward (two-pass BN variance)."""
    (w1, b1, g1, be1, w2, b2, g2, be2, w3, b3, g3, be3,
     wir, wiz, win, whr, whz, whn, bir, biz, bin_, bhr, bhz, bhn,
     w4, b4, g4, be4, w5, b5, g5, be5, w6, b6, g6, be6) = params

    def lbn(h, w, b, g, be, relu=True):
        y = h @ w + b
        mu = jnp.mean(y, 0, keepdims=True)
        var = jnp.mean((y - mu) ** 2, 0, keepdims=True)
        y = (y - mu) * lax.rsqrt(var + EPS) * g + be
        return jnp.maximum(y, 0.0) if relu else y

    B, T, C = x.shape
    h = x.reshape(B * T, C).astype(jnp.float32)
    h = lbn(h, w1, b1, g1, be1)
    h = lbn(h, w2, b2, g2, be2)
    h = lbn(h, w3, b3, g3, be3)
    xin = h.reshape(B, T, HIDDEN)
    hid = jnp.zeros((B, HIDDEN), jnp.float32)
    for t in range(T):
        xt = xin[:, t, :]
        r = jax.nn.sigmoid(xt @ wir + bir + hid @ whr + bhr)
        z = jax.nn.sigmoid(xt @ wiz + biz + hid @ whz + bhz)
        n = jnp.tanh(xt @ win + bin_ + r * (hid @ whn + bhn))
        hid = (1.0 - z) * n + z * hid
    o = lbn(hid, w4, b4, g4, be4)
    o = lbn(o, w5, b5, g5, be5)
    o = lbn(o, w6, b6, g6, be6, relu=False)
    return o[:, 0], jnp.abs(o[:, 1])


if __name__ == "__main__":
    key = jax.random.PRNGKey(0)
    k_x, k_p = jax.random.split(key)

    batch, timesteps, channels = 2, 8, 4
    x = jax.random.normal(k_x, (batch, timesteps, channels), jnp.float32)
    params = init_params(k_p, input_channels=channels)

    # Parameter packing done ONCE (init-time), not per forward call.
    wlin, wgru, bnv, bgru = pack_params(params)
    jax.block_until_ready((wlin, wgru, bnv, bgru))

    mean, scale = market_predictor(x, wlin, wgru, bnv, bgru)
    jax.block_until_ready((mean, scale))

    ref_mean, ref_scale = _ref_forward(x, params)
    assert jnp.allclose(mean, ref_mean, rtol=1e-3, atol=1e-3), (mean, ref_mean)
    assert jnp.allclose(scale, ref_scale, rtol=1e-3, atol=1e-3), (scale, ref_scale)

    # TODO(synk): torch.distributions.Normal has no Pallas equivalent; the kernel
    # returns its parameters (mean, scale=|second output|) instead of a distribution.
    print("KERNEL_OK")
</pallas_src>

<mosaic_0001>
module attributes {stable_mosaic.version = 11 : i64} {
  func.func @market_predictor_kernel(%arg0: memref<16x16xf32, #tpu.memory_space<vmem>>, %arg1: memref<6x16x16xf32, #tpu.memory_space<vmem>>, %arg2: memref<2x16x48xf32, #tpu.memory_space<vmem>>, %arg3: memref<6x3x16xf32, #tpu.memory_space<vmem>>, %arg4: memref<2x48xf32, #tpu.memory_space<vmem>>, %arg5: memref<2x16xf32, #tpu.memory_space<vmem>>) attributes {dimension_semantics = [], scalar_prefetch = 0 : i64, scratch_operands = 0 : i64, tpu.core_type = #tpu.core_type<tc>} {
    %c0 = arith.constant 0 : index
    %c0_0 = arith.constant 0 : index
    %0 = vector.load %arg0[%c0, %c0_0] : memref<16x16xf32, #tpu.memory_space<vmem>>, vector<16x16xf32>
    %c0_1 = arith.constant 0 : index
    %c0_2 = arith.constant 0 : index
    %c0_3 = arith.constant 0 : index
    %1 = vector.load %arg1[%c0_1, %c0_2, %c0_3] : memref<6x16x16xf32, #tpu.memory_space<vmem>>, vector<1x16x16xf32>
    %2 = vector.shape_cast %1 : vector<1x16x16xf32> to vector<16x16xf32>
    %c0_4 = arith.constant 0 : index
    %c0_5 = arith.constant 0 : index
    %c0_6 = arith.constant 0 : index
    %3 = vector.load %arg3[%c0_4, %c0_5, %c0_6] : memref<6x3x16xf32, #tpu.memory_space<vmem>>, vector<1x3x16xf32>
    %4 = vector.shape_cast %3 : vector<1x3x16xf32> to vector<3x16xf32>
    %cst = arith.constant dense<0.000000e+00> : vector<16x16xf32>
    %5 = tpu.matmul %0, %2, %cst {dimension_numbers = #tpu.dot_dimension_numbers<[1], [0], [0], [1], [0, 0, 1, 1], [], []>} : vector<16x16xf32>, vector<16x16xf32>, vector<16x16xf32> -> vector<16x16xf32>
    %6 = vector.extract_strided_slice %4 {offsets = [0, 0], sizes = [1, 16], strides = [1, 1]} : vector<3x16xf32> to vector<1x16xf32>
    %7 = vector.broadcast %6 : vector<1x16xf32> to vector<16x16xf32>
    %8 = arith.addf %5, %7 : vector<16x16xf32>
    %cst_7 = arith.constant dense<0.000000e+00> : vector<16xf32>
    %9 = vector.multi_reduction <add>, %8, %cst_7 [0] : vector<16x16xf32> to vector<16xf32>
    %10 = vector.shape_cast %9 : vector<16xf32> to vector<1x16xf32>
    %cst_8 = arith.constant 6.250000e-02 : f32
    %11 = vector.broadcast %cst_8 : f32 to vector<1x16xf32>
    %12 = arith.mulf %10, %11 : vector<1x16xf32>
    %13 = arith.mulf %8, %8 : vector<16x16xf32>
    %cst_9 = arith.constant dense<0.000000e+00> : vector<16xf32>
    %14 = vector.multi_reduction <add>, %13, %cst_9 [0] : vector<16x16xf32> to vector<16xf32>
    %15 = vector.shape_cast %14 : vector<16xf32> to vector<1x16xf32>
    %cst_10 = arith.constant 6.250000e-02 : f32
    %16 = vector.broadcast %cst_10 : f32 to vector<1x16xf32>
    %17 = arith.mulf %15, %16 : vector<1x16xf32>
    %18 = arith.mulf %12, %12 : vector<1x16xf32>
    %19 = arith.subf %17, %18 : vector<1x16xf32>
    %20 = vector.extract_strided_slice %4 {offsets = [1, 0], sizes = [1, 16], strides = [1, 1]} : vector<3x16xf32> to vector<1x16xf32>
    %cst_11 = arith.constant 9.99999974E-6 : f32
    %21 = vector.broadcast %cst_11 : f32 to vector<1x16xf32>
    %22 = arith.addf %19, %21 : vector<1x16xf32>
    %23 = math.rsqrt %22 : vector<1x16xf32>
    %24 = arith.mulf %20, %23 : vector<1x16xf32>
    %25 = vector.extract_strided_slice %4 {offsets = [2, 0], sizes = [1, 16], strides = [1, 1]} : vector<3x16xf32> to vector<1x16xf32>
    %26 = arith.mulf %12, %24 : vector<1x16xf32>
    %27 = arith.subf %25, %26 : vector<1x16xf32>
    %28 = vector.broadcast %24 : vector<1x16xf32> to vector<16x16xf32>
    %29 = arith.mulf %8, %28 : vector<16x16xf32>
    %30 = vector.broadcast %27 : vector<1x16xf32> to vector<16x16xf32>
    %31 = arith.addf %29, %30 : vector<16x16xf32>
    %cst_12 = arith.constant 0.000000e+00 : f32
    %32 = vector.broadcast %cst_12 : f32 to vector<16x16xf32>
    %33 = arith.maximumf %31, %32 : vector<16x16xf32>
    %c1 = arith.constant 1 : index
    %c0_13 = arith.constant 0 : index
    %c0_14 = arith.constant 0 : index
    %34 = vector.load %arg1[%c1, %c0_13, %c0_14] : memref<6x16x16xf32, #tpu.memory_space<vmem>>, vector<1x16x16xf32>
    %35 = vector.shape_cast %34 : vector<1x16x16xf32> to vector<16x16xf32>
    %c1_15 = arith.constant 1 : index
    %c0_16 = arith.constant 0 : index
    %c0_17 = arith.constant 0 : index
    %36 = vector.load %arg3[%c1_15, %c0_16, %c0_17] : memref<6x3x16xf32, #tpu.memory_space<vmem>>, vector<1x3x16xf32>
    %37 = vector.shape_cast %36 : vector<1x3x16xf32> to vector<3x16xf32>
    %cst_18 = arith.constant dense<0.000000e+00> : vector<16x16xf32>
    %38 = tpu.matmul %33, %35, %cst_18 {dimension_numbers = #tpu.dot_dimension_numbers<[1], [0], [0], [1], [0, 0, 1, 1], [], []>} : vector<16x16xf32>, vector<16x16xf32>, vector<16x16xf32> -> vector<16x16xf32>
    %39 = vector.extract_strided_slice %37 {offsets = [0, 0], sizes = [1, 16], strides = [1, 1]} : vector<3x16xf32> to vector<1x16xf32>
    %40 = vector.broadcast %39 : vector<1x16xf32> to vector<16x16xf32>
    %41 = arith.addf %38, %40 : vector<16x16xf32>
    %cst_19 = arith.constant dense<0.000000e+00> : vector<16xf32>
    %42 = vector.multi_reduction <add>, %41, %cst_19 [0] : vector<16x16xf32> to vector<16xf32>
    %43 = vector.shape_cast %42 : vector<16xf32> to vector<1x16xf32>
    %cst_20 = arith.constant 6.250000e-02 : f32
    %44 = vector.broadcast %cst_20 : f32 to vector<1x16xf32>
    %45 = arith.mulf %43, %44 : vector<1x16xf32>
    %46 = arith.mulf %41, %41 : vector<16x16xf32>
    %cst_21 = arith.constant dense<0.000000e+00> : vector<16xf32>
    %47 = vector.multi_reduction <add>, %46, %cst_21 [0] : vector<16x16xf32> to vector<16xf32>
    %48 = vector.shape_cast %47 : vector<16xf32> to vector<1x16xf32>
    %cst_22 = arith.constant 6.250000e-02 : f32
    %49 = vector.broadcast %cst_22 : f32 to vector<1x16xf32>
    %50 = arith.mulf %48, %49 : vector<1x16xf32>
    %51 = arith.mulf %45, %45 : vector<1x16xf32>
    %52 = arith.subf %50, %51 : vector<1x16xf32>
    %53 = vector.extract_strided_slice %37 {offsets = [1, 0], sizes = [1, 16], strides = [1, 1]} : vector<3x16xf32> to vector<1x16xf32>
    %cst_23 = arith.constant 9.99999974E-6 : f32
    %54 = vector.broadcast %cst_23 : f32 to vector<1x16xf32>
    %55 = arith.addf %52, %54 : vector<1x16xf32>
    %56 = math.rsqrt %55 : vector<1x16xf32>
    %57 = arith.mulf %53, %56 : vector<1x16xf32>
    %58 = vector.extract_strided_slice %37 {offsets = [2, 0], sizes = [1, 16], strides = [1, 1]} : vector<3x16xf32> to vector<1x16xf32>
    %59 = arith.mulf %45, %57 : vector<1x16xf32>
    %60 = arith.subf %58, %59 : vector<1x16xf32>
    %61 = vector.broadcast %57 : vector<1x16xf32> to vector<16x16xf32>
    %62 = arith.mulf %41, %61 : vector<16x16xf32>
    %63 = vector.broadcast %60 : vector<1x16xf32> to vector<16x16xf32>
    %64 = arith.addf %62, %63 : vector<16x16xf32>
    %cst_24 = arith.constant 0.000000e+00 : f32
    %65 = vector.broadcast %cst_24 : f32 to vector<16x16xf32>
    %66 = arith.maximumf %64, %65 : vector<16x16xf32>
    %c2 = arith.constant 2 : index
    %c0_25 = arith.constant 0 : index
    %c0_26 = arith.constant 0 : index
    %67 = vector.load %arg1[%c2, %c0_25, %c0_26] : memref<6x16x16xf32, #tpu.memory_space<vmem>>, vector<1x16x16xf32>
    %68 = vector.shape_cast %67 : vector<1x16x16xf32> to vector<16x16xf32>
    %c2_27 = arith.constant 2 : index
    %c0_28 = arith.constant 0 : index
    %c0_29 = arith.constant 0 : index
    %69 = vector.load %arg3[%c2_27, %c0_28, %c0_29] : memref<6x3x16xf32, #tpu.memory_space<vmem>>, vector<1x3x16xf32>
    %70 = vector.shape_cast %69 : vector<1x3x16xf32> to vector<3x16xf32>
    %cst_30 = arith.constant dense<0.000000e+00> : vector<16x16xf32>
    %71 = tpu.matmul %66, %68, %cst_30 {dimension_numbers = #tpu.dot_dimension_numbers<[1], [0], [0], [1], [0, 0, 1, 1], [], []>} : vector<16x16xf32>, vector<16x16xf32>, vector<16x16xf32> -> vector<16x16xf32>
    %72 = vector.extract_strided_slice %70 {offsets = [0, 0], sizes = [1, 16], strides = [1, 1]} : vector<3x16xf32> to vector<1x16xf32>
    %73 = vector.broadcast %72 : vector<1x16xf32> to vector<16x16xf32>
    %74 = arith.addf %71, %73 : vector<16x16xf32>
    %cst_31 = arith.constant dense<0.000000e+00> : vector<16xf32>
    %75 = vector.multi_reduction <add>, %74, %cst_31 [0] : vector<16x16xf32> to vector<16xf32>
    %76 = vector.shape_cast %75 : vector<16xf32> to vector<1x16xf32>
    %cst_32 = arith.constant 6.250000e-02 : f32
    %77 = vector.broadcast %cst_32 : f32 to vector<1x16xf32>
    %78 = arith.mulf %76, %77 : vector<1x16xf32>
    %79 = arith.mulf %74, %74 : vector<16x16xf32>
    %cst_33 = arith.constant dense<0.000000e+00> : vector<16xf32>
    %80 = vector.multi_reduction <add>, %79, %cst_33 [0] : vector<16x16xf32> to vector<16xf32>
    %81 = vector.shape_cast %80 : vector<16xf32> to vector<1x16xf32>
    %cst_34 = arith.constant 6.250000e-02 : f32
    %82 = vector.broadcast %cst_34 : f32 to vector<1x16xf32>
    %83 = arith.mulf %81, %82 : vector<1x16xf32>
    %84 = arith.mulf %78, %78 : vector<1x16xf32>
    %85 = arith.subf %83, %84 : vector<1x16xf32>
    %86 = vector.extract_strided_slice %70 {offsets = [1, 0], sizes = [1, 16], strides = [1, 1]} : vector<3x16xf32> to vector<1x16xf32>
    %cst_35 = arith.constant 9.99999974E-6 : f32
    %87 = vector.broadcast %cst_35 : f32 to vector<1x16xf32>
    %88 = arith.addf %85, %87 : vector<1x16xf32>
    %89 = math.rsqrt %88 : vector<1x16xf32>
    %90 = arith.mulf %86, %89 : vector<1x16xf32>
    %91 = vector.extract_strided_slice %70 {offsets = [2, 0], sizes = [1, 16], strides = [1, 1]} : vector<3x16xf32> to vector<1x16xf32>
    %92 = arith.mulf %78, %90 : vector<1x16xf32>
    %93 = arith.subf %91, %92 : vector<1x16xf32>
    %94 = vector.broadcast %90 : vector<1x16xf32> to vector<16x16xf32>
    %95 = arith.mulf %74, %94 : vector<16x16xf32>
    %96 = vector.broadcast %93 : vector<1x16xf32> to vector<16x16xf32>
    %97 = arith.addf %95, %96 : vector<16x16xf32>
    %cst_36 = arith.constant 0.000000e+00 : f32
    %98 = vector.broadcast %cst_36 : f32 to vector<16x16xf32>
    %99 = arith.maximumf %97, %98 : vector<16x16xf32>
    %c0_37 = arith.constant 0 : index
    %c0_38 = arith.constant 0 : index
    %c0_39 = arith.constant 0 : index
    %100 = vector.load %arg2[%c0_37, %c0_38, %c0_39] : memref<2x16x48xf32, #tpu.memory_space<vmem>>, vector<1x16x48xf32>
    %101 = vector.shape_cast %100 : vector<1x16x48xf32> to vector<16x48xf32>
    %c1_40 = arith.constant 1 : index
    %c0_41 = arith.constant 0 : index
    %c0_42 = arith.constant 0 : index
    %102 = vector.load %arg2[%c1_40, %c0_41, %c0_42] : memref<2x16x48xf32, #tpu.memory_space<vmem>>, vector<1x16x48xf32>
    %103 = vector.shape_cast %102 : vector<1x16x48xf32> to vector<16x48xf32>
    %c0_43 = arith.constant 0 : index
    %c0_44 = arith.constant 0 : index
    %104 = vector.load %arg4[%c0_43, %c0_44] : memref<2x48xf32, #tpu.memory_space<vmem>>, vector<2x48xf32>
    %cst_45 = arith.constant dense<0.000000e+00> : vector<16x48xf32>
    %105 = tpu.matmul %99, %101, %cst_45 {dimension_numbers = #tpu.dot_dimension_numbers<[1], [0], [0], [1], [0, 0, 1, 1], [], []>} : vector<16x16xf32>, vector<16x48xf32>, vector<16x48xf32> -> vector<16x48xf32>
    %106 = vector.extract_strided_slice %104 {offsets = [0, 0], sizes = [1, 48], strides = [1, 1]} : vector<2x48xf32> to vector<1x48xf32>
    %107 = vector.broadcast %106 : vector<1x48xf32> to vector<16x48xf32>
    %108 = arith.addf %105, %107 : vector<16x48xf32>
    %109 = vector.extract_strided_slice %104 {offsets = [1, 0], sizes = [1, 16], strides = [1, 1]} : vector<2x48xf32> to vector<1x16xf32>
    %110 = vector.shape_cast %109 : vector<1x16xf32> to vector<1x16xf32>
    %111 = vector.broadcast %110 : vector<1x16xf32> to vector<2x16xf32>
    %112 = vector.extract_strided_slice %108 {offsets = [0, 0], sizes = [2, 48], strides = [1, 1]} : vector<16x48xf32> to vector<2x48xf32>
    %113 = vector.extract_strided_slice %108 {offsets = [2, 0], sizes = [2, 48], strides = [1, 1]} : vector<16x48xf32> to vector<2x48xf32>
    %114 = vector.extract_strided_slice %108 {offsets = [4, 0], sizes = [2, 48], strides = [1, 1]} : vector<16x48xf32> to vector<2x48xf32>
    %115 = vector.extract_strided_slice %108 {offsets = [6, 0], sizes = [2, 48], strides = [1, 1]} : vector<16x48xf32> to vector<2x48xf32>
    %116 = vector.extract_strided_slice %108 {offsets = [8, 0], sizes = [2, 48], strides = [1, 1]} : vector<16x48xf32> to vector<2x48xf32>
    %117 = vector.extract_strided_slice %108 {offsets = [10, 0], sizes = [2, 48], strides = [1, 1]} : vector<16x48xf32> to vector<2x48xf32>
    %118 = vector.extract_strided_slice %108 {offsets = [12, 0], sizes = [2, 48], strides = [1, 1]} : vector<16x48xf32> to vector<2x48xf32>
    %119 = vector.extract_strided_slice %108 {offsets = [14, 0], sizes = [2, 48], strides = [1, 1]} : vector<16x48xf32> to vector<2x48xf32>
    %cst_46 = arith.constant 0.000000e+00 : f32
    %120 = vector.broadcast %cst_46 : f32 to vector<2x16xf32>
    %cst_47 = arith.constant dense<0.000000e+00> : vector<2x48xf32>
    %121 = tpu.matmul %120, %103, %cst_47 {dimension_numbers = #tpu.dot_dimension_numbers<[1], [0], [0], [1], [0, 0, 1, 1], [], []>} : vector<2x16xf32>, vector<16x48xf32>, vector<2x48xf32> -> vector<2x48xf32>
    %122 = vector.extract_strided_slice %112 {offsets = [0, 0], sizes = [2, 32], strides = [1, 1]} : vector<2x48xf32> to vector<2x32xf32>
    %123 = vector.extract_strided_slice %121 {offsets = [0, 0], sizes = [2, 32], strides = [1, 1]} : vector<2x48xf32> to vector<2x32xf32>
    %124 = arith.addf %122, %123 : vector<2x32xf32>
    %125 = arith.negf %124 : vector<2x32xf32>
    %126 = math.exp %125 : vector<2x32xf32>
    %cst_48 = arith.constant 1.000000e+00 : f32
    %127 = vector.broadcast %cst_48 : f32 to vector<2x32xf32>
    %128 = arith.addf %127, %126 : vector<2x32xf32>
    %129 = arith.divf %127, %128 : vector<2x32xf32>
    %130 = vector.extract_strided_slice %129 {offsets = [0, 0], sizes = [2, 16], strides = [1, 1]} : vector<2x32xf32> to vector<2x16xf32>
    %131 = vector.extract_strided_slice %129 {offsets = [0, 16], sizes = [2, 16], strides = [1, 1]} : vector<2x32xf32> to vector<2x16xf32>
    %132 = vector.extract_strided_slice %112 {offsets = [0, 32], sizes = [2, 16], strides = [1, 1]} : vector<2x48xf32> to vector<2x16xf32>
    %133 = vector.extract_strided_slice %121 {offsets = [0, 32], sizes = [2, 16], strides = [1, 1]} : vector<2x48xf32> to vector<2x16xf32>
    %134 = arith.addf %133, %111 : vector<2x16xf32>
    %135 = arith.mulf %130, %134 : vector<2x16xf32>
    %136 = arith.addf %132, %135 : vector<2x16xf32>
    %137 = math.tanh %136 : vector<2x16xf32>
    %cst_49 = arith.constant 1.000000e+00 : f32
    %138 = vector.broadcast %cst_49 : f32 to vector<2x16xf32>
    %139 = arith.subf %138, %131 : vector<2x16xf32>
    %140 = arith.mulf %139, %137 : vector<2x16xf32>
    %141 = arith.mulf %131, %120 : vector<2x16xf32>
    %142 = arith.addf %140, %141 : vector<2x16xf32>
    %cst_50 = arith.constant dense<0.000000e+00> : vector<2x48xf32>
    %143 = tpu.matmul %142, %103, %cst_50 {dimension_numbers = #tpu.dot_dimension_numbers<[1], [0], [0], [1], [0, 0, 1, 1], [], []>} : vector<2x16xf32>, vector<16x48xf32>, vector<2x48xf32> -> vector<2x48xf32>
    %144 = vector.extract_strided_slice %113 {offsets = [0, 0], sizes = [2, 32], strides = [1, 1]} : vector<2x48xf32> to vector<2x32xf32>
    %145 = vector.extract_strided_slice %143 {offsets = [0, 0], sizes = [2, 32], strides = [1, 1]} : vector<2x48xf32> to vector<2x32xf32>
    %146 = arith.addf %144, %145 : vector<2x32xf32>
    %147 = arith.negf %146 : vector<2x32xf32>
    %148 = math.exp %147 : vector<2x32xf32>
    %cst_51 = arith.constant 1.000000e+00 : f32
    %149 = vector.broadcast %cst_51 : f32 to vector<2x32xf32>
    %150 = arith.addf %149, %148 : vector<2x32xf32>
    %151 = arith.divf %149, %150 : vector<2x32xf32>
    %152 = vector.extract_strided_slice %151 {offsets = [0, 0], sizes = [2, 16], strides = [1, 1]} : vector<2x32xf32> to vector<2x16xf32>
    %153 = vector.extract_strided_slice %151 {offsets = [0, 16], sizes = [2, 16], strides = [1, 1]} : vector<2x32xf32> to vector<2x16xf32>
    %154 = vector.extract_strided_slice %113 {offsets = [0, 32], sizes = [2, 16], strides = [1, 1]} : vector<2x48xf32> to vector<2x16xf32>
    %155 = vector.extract_strided_slice %143 {offsets = [0, 32], sizes = [2, 16], strides = [1, 1]} : vector<2x48xf32> to vector<2x16xf32>
    %156 = arith.addf %155, %111 : vector<2x16xf32>
    %157 = arith.mulf %152, %156 : vector<2x16xf32>
    %158 = arith.addf %154, %157 : vector<2x16xf32>
    %159 = math.tanh %158 : vector<2x16xf32>
    %cst_52 = arith.constant 1.000000e+00 : f32
    %160 = vector.broadcast %cst_52 : f32 to vector<2x16xf32>
    %161 = arith.subf %160, %153 : vector<2x16xf32>
    %162 = arith.mulf %161, %159 : vector<2x16xf32>
    %163 = arith.mulf %153, %142 : vector<2x16xf32>
    %164 = arith.addf %162, %163 : vector<2x16xf32>
    %cst_53 = arith.constant dense<0.000000e+00> : vector<2x48xf32>
    %165 = tpu.matmul %164, %103, %cst_53 {dimension_numbers = #tpu.dot_dimension_numbers<[1], [0], [0], [1], [0, 0, 1, 1], [], []>} : vector<2x16xf32>, vector<16x48xf32>, vector<2x48xf32> -> vector<2x48xf32>
    %166 = vector.extract_strided_slice %114 {offsets = [0, 0], sizes = [2, 32], strides = [1, 1]} : vector<2x48xf32> to vector<2x32xf32>
    %167 = vector.extract_strided_slice %165 {offsets = [0, 0], sizes = [2, 32], strides = [1, 1]} : vector<2x48xf32> to vector<2x32xf32>
    %168 = arith.addf %166, %167 : vector<2x32xf32>
    %169 = arith.negf %168 : vector<2x32xf32>
    %170 = math.exp %169 : vector<2x32xf32>
    %cst_54 = arith.constant 1.000000e+00 : f32
    %171 = vector.broadcast %cst_54 : f32 to vector<2x32xf32>
    %172 = arith.addf %171, %170 : vector<2x32xf32>
    %173 = arith.divf %171, %172 : vector<2x32xf32>
    %174 = vector.extract_strided_slice %173 {offsets = [0, 0], sizes = [2, 16], strides = [1, 1]} : vector<2x32xf32> to vector<2x16xf32>
    %175 = vector.extract_strided_slice %173 {offsets = [0, 16], sizes = [2, 16], strides = [1, 1]} : vector<2x32xf32> to vector<2x16xf32>
    %176 = vector.extract_strided_slice %114 {offsets = [0, 32], sizes = [2, 16], strides = [1, 1]} : vector<2x48xf32> to vector<2x16xf32>
    %177 = vector.extract_strided_slice %165 {offsets = [0, 32], sizes = [2, 16], strides = [1, 1]} : vector<2x48xf32> to vector<2x16xf32>
    %178 = arith.addf %177, %111 : vector<2x16xf32>
    %179 = arith.mulf %174, %178 : vector<2x16xf32>
    %180 = arith.addf %176, %179 : vector<2x16xf32>
    %181 = math.tanh %180 : vector<2x16xf32>
    %cst_55 = arith.constant 1.000000e+00 : f32
    %182 = vector.broadcast %cst_55 : f32 to vector<2x16xf32>
    %183 = arith.subf %182, %175 : vector<2x16xf32>
    %184 = arith.mulf %183, %181 : vector<2x16xf32>
    %185 = arith.mulf %175, %164 : vector<2x16xf32>
    %186 = arith.addf %184, %185 : vector<2x16xf32>
    %cst_56 = arith.constant dense<0.000000e+00> : vector<2x48xf32>
    %187 = tpu.matmul %186, %103, %cst_56 {dimension_numbers = #tpu.dot_dimension_numbers<[1], [0], [0], [1], [0, 0, 1, 1], [], []>} : vector<2x16xf32>, vector<16x48xf32>, vector<2x48xf32> -> vector<2x48xf32>
    %188 = vector.extract_strided_slice %115 {offsets = [0, 0], sizes = [2, 32], strides = [1, 1]} : vector<2x48xf32> to vector<2x32xf32>
    %189 = vector.extract_strided_slice %187 {offsets = [0, 0], sizes = [2, 32], strides = [1, 1]} : vector<2x48xf32> to vector<2x32xf32>
    %190 = arith.addf %188, %189 : vector<2x32xf32>
    %191 = arith.negf %190 : vector<2x32xf32>
    %192 = math.exp %191 : vector<2x32xf32>
    %cst_57 = arith.constant 1.000000e+00 : f32
    %193 = vector.broadcast %cst_57 : f32 to vector<2x32xf32>
    %194 = arith.addf %193, %192 : vector<2x32xf32>
    %195 = arith.divf %193, %194 : vector<2x32xf32>
    %196 = vector.extract_strided_slice %195 {offsets = [0, 0], sizes = [2, 16], strides = [1, 1]} : vector<2x32xf32> to vector<2x16xf32>
    %197 = vector.extract_strided_slice %195 {offsets = [0, 16], sizes = [2, 16], strides = [1, 1]} : vector<2x32xf32> to vector<2x16xf32>
    %198 = vector.extract_strided_slice %115 {offsets = [0, 32], sizes = [2, 16], strides = [1, 1]} : vector<2x48xf32> to vector<2x16xf32>
    %199 = vector.extract_strided_slice %187 {offsets = [0, 32], sizes = [2, 16], strides = [1, 1]} : vector<2x48xf32> to vector<2x16xf32>
    %200 = arith.addf %199, %111 : vector<2x16xf32>
    %201 = arith.mulf %196, %200 : vector<2x16xf32>
    %202 = arith.addf %198, %201 : vector<2x16xf32>
    %203 = math.tanh %202 : vector<2x16xf32>
    %cst_58 = arith.constant 1.000000e+00 : f32
    %204 = vector.broadcast %cst_58 : f32 to vector<2x16xf32>
    %205 = arith.subf %204, %197 : vector<2x16xf32>
    %206 = arith.mulf %205, %203 : vector<2x16xf32>
    %207 = arith.mulf %197, %186 : vector<2x16xf32>
    %208 = arith.addf %206, %207 : vector<2x16xf32>
    %cst_59 = arith.constant dense<0.000000e+00> : vector<2x48xf32>
    %209 = tpu.matmul %208, %103, %cst_59 {dimension_numbers = #tpu.dot_dimension_numbers<[1], [0], [0], [1], [0, 0, 1, 1], [], []>} : vector<2x16xf32>, vector<16x48xf32>, vector<2x48xf32> -> vector<2x48xf32>
    %210 = vector.extract_strided_slice %116 {offsets = [0, 0], sizes = [2, 32], strides = [1, 1]} : vector<2x48xf32> to vector<2x32xf32>
    %211 = vector.extract_strided_slice %209 {offsets = [0, 0], sizes = [2, 32], strides = [1, 1]} : vector<2x48xf32> to vector<2x32xf32>
    %212 = arith.addf %210, %211 : vector<2x32xf32>
    %213 = arith.negf %212 : vector<2x32xf32>
    %214 = math.exp %213 : vector<2x32xf32>
    %cst_60 = arith.constant 1.000000e+00 : f32
    %215 = vector.broadcast %cst_60 : f32 to vector<2x32xf32>
    %216 = arith.addf %215, %214 : vector<2x32xf32>
    %217 = arith.divf %215, %216 : vector<2x32xf32>
    %218 = vector.extract_strided_slice %217 {offsets = [0, 0], sizes = [2, 16], strides = [1, 1]} : vector<2x32xf32> to vector<2x16xf32>
    %219 = vector.extract_strided_slice %217 {offsets = [0, 16], sizes = [2, 16], strides = [1, 1]} : vector<2x32xf32> to vector<2x16xf32>
    %220 = vector.extract_strided_slice %116 {offsets = [0, 32], sizes = [2, 16], strides = [1, 1]} : vector<2x48xf32> to vector<2x16xf32>
    %221 = vector.extract_strided_slice %209 {offsets = [0, 32], sizes = [2, 16], strides = [1, 1]} : vector<2x48xf32> to vector<2x16xf32>
    %222 = arith.addf %221, %111 : vector<2x16xf32>
    %223 = arith.mulf %218, %222 : vector<2x16xf32>
    %224 = arith.addf %220, %223 : vector<2x16xf32>
    %225 = math.tanh %224 : vector<2x16xf32>
    %cst_61 = arith.constant 1.000000e+00 : f32
    %226 = vector.broadcast %cst_61 : f32 to vector<2x16xf32>
    %227 = arith.subf %226, %219 : vector<2x16xf32>
    %228 = arith.mulf %227, %225 : vector<2x16xf32>
    %229 = arith.mulf %219, %208 : vector<2x16xf32>
    %230 = arith.addf %228, %229 : vector<2x16xf32>
    %cst_62 = arith.constant dense<0.000000e+00> : vector<2x48xf32>
    %231 = tpu.matmul %230, %103, %cst_62 {dimension_numbers = #tpu.dot_dimension_numbers<[1], [0], [0], [1], [0, 0, 1, 1], [], []>} : vector<2x16xf32>, vector<16x48xf32>, vector<2x48xf32> -> vector<2x48xf32>
    %232 = vector.extract_strided_slice %117 {offsets = [0, 0], sizes = [2, 32], strides = [1, 1]} : vector<2x48xf32> to vector<2x32xf32>
    %233 = vector.extract_strided_slice %231 {offsets = [0, 0], sizes = [2, 32], strides = [1, 1]} : vector<2x48xf32> to vector<2x32xf32>
    %234 = arith.addf %232, %233 : vector<2x32xf32>
    %235 = arith.negf %234 : vector<2x32xf32>
    %236 = math.exp %235 : vector<2x32xf32>
    %cst_63 = arith.constant 1.000000e+00 : f32
    %237 = vector.broadcast %cst_63 : f32 to vector<2x32xf32>
    %238 = arith.addf %237, %236 : vector<2x32xf32>
    %239 = arith.divf %237, %238 : vector<2x32xf32>
    %240 = vector.extract_strided_slice %239 {offsets = [0, 0], sizes = [2, 16], strides = [1, 1]} : vector<2x32xf32> to vector<2x16xf32>
    %241 = vector.extract_strided_slice %239 {offsets = [0, 16], sizes = [2, 16], strides = [1, 1]} : vector<2x32xf32> to vector<2x16xf32>
    %242 = vector.extract_strided_slice %117 {offsets = [0, 32], sizes = [2, 16], strides = [1, 1]} : vector<2x48xf32> to vector<2x16xf32>
    %243 = vector.extract_strided_slice %231 {offsets = [0, 32], sizes = [2, 16], strides = [1, 1]} : vector<2x48xf32> to vector<2x16xf32>
    %244 = arith.addf %243, %111 : vector<2x16xf32>
    %245 = arith.mulf %240, %244 : vector<2x16xf32>
    %246 = arith.addf %242, %245 : vector<2x16xf32>
    %247 = math.tanh %246 : vector<2x16xf32>
    %cst_64 = arith.constant 1.000000e+00 : f32
    %248 = vector.broadcast %cst_64 : f32 to vector<2x16xf32>
    %249 = arith.subf %248, %241 : vector<2x16xf32>
    %250 = arith.mulf %249, %247 : vector<2x16xf32>
    %251 = arith.mulf %241, %230 : vector<2x16xf32>
    %252 = arith.addf %250, %251 : vector<2x16xf32>
    %cst_65 = arith.constant dense<0.000000e+00> : vector<2x48xf32>
    %253 = tpu.matmul %252, %103, %cst_65 {dimension_numbers = #tpu.dot_dimension_numbers<[1], [0], [0], [1], [0, 0, 1, 1], [], []>} : vector<2x16xf32>, vector<16x48xf32>, vector<2x48xf32> -> vector<2x48xf32>
    %254 = vector.extract_strided_slice %118 {offsets = [0, 0], sizes = [2, 32], strides = [1, 1]} : vector<2x48xf32> to vector<2x32xf32>
    %255 = vector.extract_strided_slice %253 {offsets = [0, 0], sizes = [2, 32], strides = [1, 1]} : vector<2x48xf32> to vector<2x32xf32>
    %256 = arith.addf %254, %255 : vector<2x32xf32>
    %257 = arith.negf %256 : vector<2x32xf32>
    %258 = math.exp %257 : vector<2x32xf32>
    %cst_66 = arith.constant 1.000000e+00 : f32
    %259 = vector.broadcast %cst_66 : f32 to vector<2x32xf32>
    %260 = arith.addf %259, %258 : vector<2x32xf32>
    %261 = arith.divf %259, %260 : vector<2x32xf32>
    %262 = vector.extract_strided_slice %261 {offsets = [0, 0], sizes = [2, 16], strides = [1, 1]} : vector<2x32xf32> to vector<2x16xf32>
    %263 = vector.extract_strided_slice %261 {offsets = [0, 16], sizes = [2, 16], strides = [1, 1]} : vector<2x32xf32> to vector<2x16xf32>
    %264 = vector.extract_strided_slice %118 {offsets = [0, 32], sizes = [2, 16], strides = [1, 1]} : vector<2x48xf32> to vector<2x16xf32>
    %265 = vector.extract_strided_slice %253 {offsets = [0, 32], sizes = [2, 16], strides = [1, 1]} : vector<2x48xf32> to vector<2x16xf32>
    %266 = arith.addf %265, %111 : vector<2x16xf32>
    %267 = arith.mulf %262, %266 : vector<2x16xf32>
    %268 = arith.addf %264, %267 : vector<2x16xf32>
    %269 = math.tanh %268 : vector<2x16xf32>
    %cst_67 = arith.constant 1.000000e+00 : f32
    %270 = vector.broadcast %cst_67 : f32 to vector<2x16xf32>
    %271 = arith.subf %270, %263 : vector<2x16xf32>
    %272 = arith.mulf %271, %269 : vector<2x16xf32>
    %273 = arith.mulf %263, %252 : vector<2x16xf32>
    %274 = arith.addf %272, %273 : vector<2x16xf32>
    %cst_68 = arith.constant dense<0.000000e+00> : vector<2x48xf32>
    %275 = tpu.matmul %274, %103, %cst_68 {dimension_numbers = #tpu.dot_dimension_numbers<[1], [0], [0], [1], [0, 0, 1, 1], [], []>} : vector<2x16xf32>, vector<16x48xf32>, vector<2x48xf32> -> vector<2x48xf32>
    %276 = vector.extract_strided_slice %119 {offsets = [0, 0], sizes = [2, 32], strides = [1, 1]} : vector<2x48xf32> to vector<2x32xf32>
    %277 = vector.extract_strided_slice %275 {offsets = [0, 0], sizes = [2, 32], strides = [1, 1]} : vector<2x48xf32> to vector<2x32xf32>
    %278 = arith.addf %276, %277 : vector<2x32xf32>
    %279 = arith.negf %278 : vector<2x32xf32>
    %280 = math.exp %279 : vector<2x32xf32>
    %cst_69 = arith.constant 1.000000e+00 : f32
    %281 = vector.broadcast %cst_69 : f32 to vector<2x32xf32>
    %282 = arith.addf %281, %280 : vector<2x32xf32>
    %283 = arith.divf %281, %282 : vector<2x32xf32>
    %284 = vector.extract_strided_slice %283 {offsets = [0, 0], sizes = [2, 16], strides = [1, 1]} : vector<2x32xf32> to vector<2x16xf32>
    %285 = vector.extract_strided_slice %283 {offsets = [0, 16], sizes = [2, 16], strides = [1, 1]} : vector<2x32xf32> to vector<2x16xf32>
    %286 = vector.extract_strided_slice %119 {offsets = [0, 32], sizes = [2, 16], strides = [1, 1]} : vector<2x48xf32> to vector<2x16xf32>
    %287 = vector.extract_strided_slice %275 {offsets = [0, 32], sizes = [2, 16], strides = [1, 1]} : vector<2x48xf32> to vector<2x16xf32>
    %288 = arith.addf %287, %111 : vector<2x16xf32>
    %289 = arith.mulf %284, %288 : vector<2x16xf32>
    %290 = arith.addf %286, %289 : vector<2x16xf32>
    %291 = math.tanh %290 : vector<2x16xf32>
    %cst_70 = arith.constant 1.000000e+00 : f32
    %292 = vector.broadcast %cst_70 : f32 to vector<2x16xf32>
    %293 = arith.subf %292, %285 : vector<2x16xf32>
    %294 = arith.mulf %293, %291 : vector<2x16xf32>
    %295 = arith.mulf %285, %274 : vector<2x16xf32>
    %296 = arith.addf %294, %295 : vector<2x16xf32>
    %c3 = arith.constant 3 : index
    %c0_71 = arith.constant 0 : index
    %c0_72 = arith.constant 0 : index
    %297 = vector.load %arg1[%c3, %c0_71, %c0_72] : memref<6x16x16xf32, #tpu.memory_space<vmem>>, vector<1x16x16xf32>
    %298 = vector.shape_cast %297 : vector<1x16x16xf32> to vector<16x16xf32>
    %c3_73 = arith.constant 3 : index
    %c0_74 = arith.constant 0 : index
    %c0_75 = arith.constant 0 : index
    %299 = vector.load %arg3[%c3_73, %c0_74, %c0_75] : memref<6x3x16xf32, #tpu.memory_space<vmem>>, vector<1x3x16xf32>
    %300 = vector.shape_cast %299 : vector<1x3x16xf32> to vector<3x16xf32>
    %cst_76 = arith.constant dense<0.000000e+00> : vector<2x16xf32>
    %301 = tpu.matmul %296, %298, %cst_76 {dimension_numbers = #tpu.dot_dimension_numbers<[1], [0], [0], [1], [0, 0, 1, 1], [], []>} : vector<2x16xf32>, vector<16x16xf32>, vector<2x16xf32> -> vector<2x16xf32>
    %302 = vector.extract_strided_slice %300 {offsets = [0, 0], sizes = [1, 16], strides = [1, 1]} : vector<3x16xf32> to vector<1x16xf32>
    %303 = vector.broadcast %302 : vector<1x16xf32> to vector<2x16xf32>
    %304 = arith.addf %301, %303 : vector<2x16xf32>
    %cst_77 = arith.constant dense<0.000000e+00> : vector<16xf32>
    %305 = vector.multi_reduction <add>, %304, %cst_77 [0] : vector<2x16xf32> to vector<16xf32>
    %306 = vector.shape_cast %305 : vector<16xf32> to vector<1x16xf32>
    %cst_78 = arith.constant 5.000000e-01 : f32
    %307 = vector.broadcast %cst_78 : f32 to vector<1x16xf32>
    %308 = arith.mulf %306, %307 : vector<1x16xf32>
    %309 = arith.mulf %304, %304 : vector<2x16xf32>
    %cst_79 = arith.constant dense<0.000000e+00> : vector<16xf32>
    %310 = vector.multi_reduction <add>, %309, %cst_79 [0] : vector<2x16xf32> to vector<16xf32>
    %311 = vector.shape_cast %310 : vector<16xf32> to vector<1x16xf32>
    %cst_80 = arith.constant 5.000000e-01 : f32
    %312 = vector.broadcast %cst_80 : f32 to vector<1x16xf32>
    %313 = arith.mulf %311, %312 : vector<1x16xf32>
    %314 = arith.mulf %308, %308 : vector<1x16xf32>
    %315 = arith.subf %313, %314 : vector<1x16xf32>
    %316 = vector.extract_strided_slice %300 {offsets = [1, 0], sizes = [1, 16], strides = [1, 1]} : vector<3x16xf32> to vector<1x16xf32>
    %cst_81 = arith.constant 9.99999974E-6 : f32
    %317 = vector.broadcast %cst_81 : f32 to vector<1x16xf32>
    %318 = arith.addf %315, %317 : vector<1x16xf32>
    %319 = math.rsqrt %318 : vector<1x16xf32>
    %320 = arith.mulf %316, %319 : vector<1x16xf32>
    %321 = vector.extract_strided_slice %300 {offsets = [2, 0], sizes = [1, 16], strides = [1, 1]} : vector<3x16xf32> to vector<1x16xf32>
    %322 = arith.mulf %308, %320 : vector<1x16xf32>
    %323 = arith.subf %321, %322 : vector<1x16xf32>
    %324 = vector.broadcast %320 : vector<1x16xf32> to vector<2x16xf32>
    %325 = arith.mulf %304, %324 : vector<2x16xf32>
    %326 = vector.broadcast %323 : vector<1x16xf32> to vector<2x16xf32>
    %327 = arith.addf %325, %326 : vector<2x16xf32>
    %cst_82 = arith.constant 0.000000e+00 : f32
    %328 = vector.broadcast %cst_82 : f32 to vector<2x16xf32>
    %329 = arith.maximumf %327, %328 : vector<2x16xf32>
    %c4 = arith.constant 4 : index
    %c0_83 = arith.constant 0 : index
    %c0_84 = arith.constant 0 : index
    %330 = vector.load %arg1[%c4, %c0_83, %c0_84] : memref<6x16x16xf32, #tpu.memory_space<vmem>>, vector<1x16x16xf32>
    %331 = vector.shape_cast %330 : vector<1x16x16xf32> to vector<16x16xf32>
    %c4_85 = arith.constant 4 : index
    %c0_86 = arith.constant 0 : index
    %c0_87 = arith.constant 0 : index
    %332 = vector.load %arg3[%c4_85, %c0_86, %c0_87] : memref<6x3x16xf32, #tpu.memory_space<vmem>>, vector<1x3x16xf32>
    %333 = vector.shape_cast %332 : vector<1x3x16xf32> to vector<3x16xf32>
    %cst_88 = arith.constant dense<0.000000e+00> : vector<2x16xf32>
    %334 = tpu.matmul %329, %331, %cst_88 {dimension_numbers = #tpu.dot_dimension_numbers<[1], [0], [0], [1], [0, 0, 1, 1], [], []>} : vector<2x16xf32>, vector<16x16xf32>, vector<2x16xf32> -> vector<2x16xf32>
    %335 = vector.extract_strided_slice %333 {offsets = [0, 0], sizes = [1, 16], strides = [1, 1]} : vector<3x16xf32> to vector<1x16xf32>
    %336 = vector.broadcast %335 : vector<1x16xf32> to vector<2x16xf32>
    %337 = arith.addf %334, %336 : vector<2x16xf32>
    %cst_89 = arith.constant dense<0.000000e+00> : vector<16xf32>
    %338 = vector.multi_reduction <add>, %337, %cst_89 [0] : vector<2x16xf32> to vector<16xf32>
    %339 = vector.shape_cast %338 : vector<16xf32> to vector<1x16xf32>
    %cst_90 = arith.constant 5.000000e-01 : f32
    %340 = vector.broadcast %cst_90 : f32 to vector<1x16xf32>
    %341 = arith.mulf %339, %340 : vector<1x16xf32>
    %342 = arith.mulf %337, %337 : vector<2x16xf32>
    %cst_91 = arith.constant dense<0.000000e+00> : vector<16xf32>
    %343 = vector.multi_reduction <add>, %342, %cst_91 [0] : vector<2x16xf32> to vector<16xf32>
    %344 = vector.shape_cast %343 : vector<16xf32> to vector<1x16xf32>
    %cst_92 = arith.constant 5.000000e-01 : f32
    %345 = vector.broadcast %cst_92 : f32 to vector<1x16xf32>
    %346 = arith.mulf %344, %345 : vector<1x16xf32>
    %347 = arith.mulf %341, %341 : vector<1x16xf32>
    %348 = arith.subf %346, %347 : vector<1x16xf32>
    %349 = vector.extract_strided_slice %333 {offsets = [1, 0], sizes = [1, 16], strides = [1, 1]} : vector<3x16xf32> to vector<1x16xf32>
    %cst_93 = arith.constant 9.99999974E-6 : f32
    %350 = vector.broadcast %cst_93 : f32 to vector<1x16xf32>
    %351 = arith.addf %348, %350 : vector<1x16xf32>
    %352 = math.rsqrt %351 : vector<1x16xf32>
    %353 = arith.mulf %349, %352 : vector<1x16xf32>
    %354 = vector.extract_strided_slice %333 {offsets = [2, 0], sizes = [1, 16], strides = [1, 1]} : vector<3x16xf32> to vector<1x16xf32>
    %355 = arith.mulf %341, %353 : vector<1x16xf32>
    %356 = arith.subf %354, %355 : vector<1x16xf32>
    %357 = vector.broadcast %353 : vector<1x16xf32> to vector<2x16xf32>
    %358 = arith.mulf %337, %357 : vector<2x16xf32>
    %359 = vector.broadcast %356 : vector<1x16xf32> to vector<2x16xf32>
    %360 = arith.addf %358, %359 : vector<2x16xf32>
    %cst_94 = arith.constant 0.000000e+00 : f32
    %361 = vector.broadcast %cst_94 : f32 to vector<2x16xf32>
    %362 = arith.maximumf %360, %361 : vector<2x16xf32>
    %c5 = arith.constant 5 : index
    %c0_95 = arith.constant 0 : index
    %c0_96 = arith.constant 0 : index
    %363 = vector.load %arg1[%c5, %c0_95, %c0_96] : memref<6x16x16xf32, #tpu.memory_space<vmem>>, vector<1x16x16xf32>
    %364 = vector.shape_cast %363 : vector<1x16x16xf32> to vector<16x16xf32>
    %c5_97 = arith.constant 5 : index
    %c0_98 = arith.constant 0 : index
    %c0_99 = arith.constant 0 : index
    %365 = vector.load %arg3[%c5_97, %c0_98, %c0_99] : memref<6x3x16xf32, #tpu.memory_space<vmem>>, vector<1x3x16xf32>
    %366 = vector.shape_cast %365 : vector<1x3x16xf32> to vector<3x16xf32>
    %cst_100 = arith.constant dense<0.000000e+00> : vector<2x16xf32>
    %367 = tpu.matmul %362, %364, %cst_100 {dimension_numbers = #tpu.dot_dimension_numbers<[1], [0], [0], [1], [0, 0, 1, 1], [], []>} : vector<2x16xf32>, vector<16x16xf32>, vector<2x16xf32> -> vector<2x16xf32>
    %368 = vector.extract_strided_slice %366 {offsets = [0, 0], sizes = [1, 16], strides = [1, 1]} : vector<3x16xf32> to vector<1x16xf32>
    %369 = vector.broadcast %368 : vector<1x16xf32> to vector<2x16xf32>
    %370 = arith.addf %367, %369 : vector<2x16xf32>
    %cst_101 = arith.constant dense<0.000000e+00> : vector<16xf32>
    %371 = vector.multi_reduction <add>, %370, %cst_101 [0] : vector<2x16xf32> to vector<16xf32>
    %372 = vector.shape_cast %371 : vector<16xf32> to vector<1x16xf32>
    %cst_102 = arith.constant 5.000000e-01 : f32
    %373 = vector.broadcast %cst_102 : f32 to vector<1x16xf32>
    %374 = arith.mulf %372, %373 : vector<1x16xf32>
    %375 = arith.mulf %370, %370 : vector<2x16xf32>
    %cst_103 = arith.constant dense<0.000000e+00> : vector<16xf32>
    %376 = vector.multi_reduction <add>, %375, %cst_103 [0] : vector<2x16xf32> to vector<16xf32>
    %377 = vector.shape_cast %376 : vector<16xf32> to vector<1x16xf32>
    %cst_104 = arith.constant 5.000000e-01 : f32
    %378 = vector.broadcast %cst_104 : f32 to vector<1x16xf32>
    %379 = arith.mulf %377, %378 : vector<1x16xf32>
    %380 = arith.mulf %374, %374 : vector<1x16xf32>
    %381 = arith.subf %379, %380 : vector<1x16xf32>
    %382 = vector.extract_strided_slice %366 {offsets = [1, 0], sizes = [1, 16], strides = [1, 1]} : vector<3x16xf32> to vector<1x16xf32>
    %cst_105 = arith.constant 9.99999974E-6 : f32
    %383 = vector.broadcast %cst_105 : f32 to vector<1x16xf32>
    %384 = arith.addf %381, %383 : vector<1x16xf32>
    %385 = math.rsqrt %384 : vector<1x16xf32>
    %386 = arith.mulf %382, %385 : vector<1x16xf32>
    %387 = vector.extract_strided_slice %366 {offsets = [2, 0], sizes = [1, 16], strides = [1, 1]} : vector<3x16xf32> to vector<1x16xf32>
    %388 = arith.mulf %374, %386 : vector<1x16xf32>
    %389 = arith.subf %387, %388 : vector<1x16xf32>
    %390 = vector.broadcast %386 : vector<1x16xf32> to vector<2x16xf32>
    %391 = arith.mulf %370, %390 : vector<2x16xf32>
    %392 = vector.broadcast %389 : vector<1x16xf32> to vector<2x16xf32>
    %393 = arith.addf %391, %392 : vector<2x16xf32>
    %394 = tpu.iota {dimensions = array<i32: 1>} : vector<2x16xi32>
    %c1_i32 = arith.constant 1 : i32
    %395 = vector.broadcast %c1_i32 : i32 to vector<2x16xi32>
    %396 = arith.cmpi eq, %394, %395 : vector<2x16xi32>
    %397 = math.absf %393 : vector<2x16xf32>
    %398 = arith.select %396, %397, %393 : vector<2x16xi1>, vector<2x16xf32>
    %c0_106 = arith.constant 0 : index
    %c0_107 = arith.constant 0 : index
    %399 = vector.load %arg5[%c0_106, %c0_107] : memref<2x16xf32, #tpu.memory_space<vmem>>, vector<2x16xf32>
    tpu.vector_store %arg5[%c0_106, %c0_107], %398 {strides = array<i32>} : memref<2x16xf32, #tpu.memory_space<vmem>>, vector<2x16xf32>,
    return
  }
}

</mosaic_0001>

<bundles_post_ra>
// kernel: market_predictor.1
= control target key start
LH: loop header
LB: loop body
LE: loop exit
PB: predicated region body
PF: predicated region fallthrough
CT: control target
= control target key end

     0   :  { %10 = vsyncpa [#allocation3], 0  ;;  %s2101_s18 = smov [#allocation2]   ;;  %s2366_s0 = inlined_call_operand.vmem [shape: f32[16,16], index: 0, kind: input, shape index: {}]   ;;  %s2367_s1 = inlined_call_operand.hbm [shape: f32[6,16,16], index: 1, kind: input, shape index: {}]   ;;  %s2368_s2 = inlined_call_operand.vmem [shape: f32[2,16,48], index: 2, kind: input, shape index: {}]   ;;  %s2369_s3 = inlined_call_operand.vmem [shape: f32[6,3,16], index: 3, kind: input, shape index: {}]   ;;  %s2370_s4 = inlined_call_operand.vmem [shape: f32[2,48], index: 4, kind: input, shape index: {}]   ;;  %s2371_s5 = inlined_call_operand.vmem [shape: f32[2,16], index: 5, kind: output, shape index: {}]  }
   0x1   :  { %s18_s19 = sshll.u32 %s2101_s18, 4  ;;  %s2077_s22 = scalar_lea.hbm %s2367_s1, 1536  ;;  %s19_s19 = int_to_ptr.vmem [resolvable:$true] %s18_s19 }
   0x2   :  { %p2078_p0 = scmp.ne.s32.totalorder %s2367_s1, %s2077_s22  ;;  %p2081_p1 = scmp.lt.u32.totalorder %s2077_s22, %s2367_s1 }
   0x4   :  { %p2083_p2 = pnand %p2081_p1, %p2078_p0 }
   0x6   :  { %2086 = shalt.err (!%p2083_p2)
}
   0x7   :  { %s2087_s27 = scalar_lea.vmem %s19_s19, 1536  ;;  %p2092_p4 = scmp.lt.s32.totalorder %s19_s19, %s19_s19 }
   0x8   :  { %p2088_p3 = scmp.ne.s32.totalorder %s19_s19, %s2087_s27  ;;  %p2093_p5 = scmp.lt.s32.totalorder %s2087_s27, %s2087_s27 }
   0xa   :  { %p2094_p6 = por %p2093_p5, %p2092_p4 }
   0xc   :  { %p2095_p7 = pnand %p2094_p6, %p2088_p3 }
   0xe   :  { %2098 = shalt.err (!%p2095_p7)
}
   0xf   :  { %s2102_s28 = smov 128   ;;  %s2103_s29 = smov 8  }
  0x10   :  { %24 = dma.hbm_to_vmem [thread:$0]  %s2367_s1, 1536, %s19_s19, [#allocation3], %s2102_s28, %s2102_s28, %s2103_s29  }
  0x11   :  { %2099 = dma.done.wait [#allocation3], 1536  }
  0x12   :  { %2100 = vsyncadd [#allocation3], 4294965760  ;;  %vm43_vm0 = vcmask 130048   ;;  %v36_v0 = vld [vmem:[#allocation2] sm:$0xff]  ;;  %v37_v1 = vld [vmem:[#allocation2 + $0x8] sm:$0xff]  ;;  %v39_v8 = vlaneseq  ;;  %v2104_v60 = vmov 0.0|0.0  }
  0x13   :  { %v34_v2 = vld [vmem:[%s2366_s0] sm:$0xff]  ;;  %v1959_v3 = vpack.c.bf16 %v37_v1, %v36_v0  ;;  %v35_v4 = vld [vmem:[%s2366_s0 + $0x8] sm:$0xff]  ;;  %v172_v5 = vld [vmem:[#allocation2 + $0x10] sm:$0xff]  ;;  %vm2105_vm1 = vmmov 0   ;;  %s2107_s23 = smov 32   ;;  %vm1483_vm2 = vcmask 123904  }
  0x14   :  { %1858 = vmatprep.mubr.msk.f32.mxu0 %vm43_vm0, %v34_v2  ;;  %v173_v6 = vld [vmem:[#allocation2 + $0x18] sm:$0xff]  ;;  %v40_v9 = vshrl.u32 %v39_v8, 7  ;;  %v38_v11 = vld [vmem:[%s2369_s3] sm:$0x7]  ;;  %v309_v58 = vld [vmem:[#allocation2 + $0x28] sm:$0xff] }
  0x15   :  { %1960 = vmatprep.subr.bf16.mxu0 %v1959_v3  ;;  %v1963_v7 = vpack.c.bf16 %v173_v6, %v172_v5  ;;  %v308_v57 = vld [vmem:[#allocation2 + $0x20] sm:$0xff] }
  0x16   :  { %1962 = vmatpush3.bf16.msra.mxu0 %v1959_v3  ;;  %v2161_v10 = vsub.s32 0, %v40_v9  ;;  %v2171_v42 = vsub.s32 1, %v40_v9  ;;  %v2174_v50 = vsub.s32 2, %v40_v9  ;;  %v1967_v59 = vpack.c.bf16 %v309_v58, %v308_v57  ;;  %v1774_v61 = vld [vmem:[%s2369_s3 + $0x4] sm:$0x7] }
  0x17   :  { %1964 = vmatprep.subr.bf16.mxu1 %v1963_v7 }
  0x18   :  { %1966 = vmatpush3.bf16.msra.mxu1 %v1963_v7  ;;  %v42_v12 = vrot.slane %v38_v11, %v2161_v10  ;;  %1968 = vmatprep.subr.bf16.mxu0 %v1967_v59  ;;  %v179_v62 = vrot.slane %v1774_v61, %v2161_v10 }
  0x19   :  { %1859 = vmatmul.mubr.msk.f32.vlgmr.msra.gmra.mrb[0].mxu0 %vm43_vm0, %v35_v4 }
  0x1a   :  { %1970 = vmatpush3.bf16.msra.mxu0 %v1967_v59 }
  0x1b   :  { %1975 = vmatprep.subr.bf16.mxu0 %v2104_v60 }
  0xec   :  { %v1860_v13 = vpop.f32.mrb[0].mxu0 }
  0xed   :  { %v122_v14 = vadd.f32 %v1860_v13, %v42_v12  ;;  %v116_v15 = vpop.f32.mrb[1].mxu0 }
  0xee   :  { %v117_v16 = vadd.f32 %v116_v15, %v42_v12 }
  0xef   :  { %v126_v17 = vsel %vm43_vm0, %v122_v14, 0.0  ;;  %v136_v18 = vmul.f32 %v122_v14, %v122_v14 }
  0xf0   :  { %v125_v19 = vsel %vm43_vm0, %v117_v16, 0.0  ;;  %v135_v20 = vmul.f32 %v117_v16, %v117_v16 }
  0xf1   :  { %v138_v21 = vsel %vm43_vm0, %v136_v18, 0.0  ;;  %v127_v22 = vadd.f32 %v126_v17, %v125_v19 }
  0xf2   :  { %v137_v23 = vsel %vm43_vm0, %v135_v20, 0.0 }
  0xf3   :  { %v128_v24 = vrot.slane %v127_v22, 4  ;;  %v139_v25 = vadd.f32 %v138_v21, %v137_v23 }
  0xf5   :  { %v129_v26 = vadd.f32 %v128_v24, %v127_v22  ;;  %v140_v27 = vrot.slane %v139_v25, 4 }
  0xf7   :  { %v130_v28 = vrot.slane %v129_v26, 2  ;;  %v141_v29 = vadd.f32 %v140_v27, %v139_v25 }
  0xf9   :  { %v131_v30 = vadd.f32 %v130_v28, %v129_v26  ;;  %v142_v31 = vrot.slane %v141_v29, 2 }
  0xfb   :  { %v132_v32 = vrot.slane %v131_v30, 1  ;;  %v143_v33 = vadd.f32 %v142_v31, %v141_v29 }
  0xfd   :  { %v144_v34 = vrot.slane %v143_v33, 1  ;;  %v133_v35 = vadd.f32 %v132_v32, %v131_v30 }
  0xff   :  { %v145_v36 = vadd.f32 %v144_v34, %v143_v33  ;;  %v134_v37 = vmul.f32 0.0625, %v133_v35 }
 0x101   :  { %v146_v38 = vmul.f32 0.0625, %v145_v36  ;;  %v147_v39 = vmul.f32 %v134_v37, %v134_v37 }
 0x103   :  { %v148_v40 = vsub.f32 %v146_v38, %v147_v39  ;;  %v1780_v39 = vld [vmem:[%s2368_s2 + $0x10] sm:$0xff] }
 0x105   :  { %v149_v41 = vadd.f32 1e-05, %v148_v40  ;;  %v1781_v40 = vld [vmem:[%s2368_s2 + $0x18] sm:$0xff] }
 0x107   :  { %2017 = vrsqrt.f32 %v149_v41 }
 0x111   :  { %v2018_v43 = vpop.eup %2017 }
 0x112   :  { %v151_v44 = vmul.f32 %v2018_v43, %v38_v11 }
 0x114   :  { %v152_v45 = vmul.f32 %v151_v44, %v134_v37  ;;  %v160_v46 = vrot.slane %v151_v44, %v2171_v42 }
 0x116   :  { %v154_v47 = vrot.slane %v152_v45, 7  ;;  %v161_v48 = vmul.f32 %v160_v46, %v117_v16  ;;  %v162_v49 = vmul.f32 %v160_v46, %v122_v14  ;;  %v2196_v46 = vpack.c.bf16 %v1781_v40, %v1780_v39 }
 0x118   :  { %v156_v51 = vsub.f32 %v38_v11, %v154_v47  ;;  %v2106_v47 = vmov 0.0  }
 0x11a   :  { %v166_v52 = vrot.slane %v156_v51, %v2174_v50 }
 0x11c   :  { %v167_v53 = vadd.f32 %v166_v52, %v161_v48  ;;  %v168_v54 = vadd.f32 %v166_v52, %v162_v49  ;;  %v443_v48 = vld [vmem:[%s2368_s2] sm:$0xff]  ;;  %v444_v49 = vld [vmem:[%s2368_s2 + $0x8] sm:$0xff]  ;;  %s2108_s2 = smov 96  }
 0x11d   :  { %v1971_v51 = vpack.c.bf16 %v444_v49, %v443_v48  ;;  %v448_v52 = vld [vmem:[%s2370_s4] sm:$0x3]  ;;  %s2109_s4 = smov 112  }
 0x11e   :  { %v169_v55 = vmax.f32 %v167_v53, 0.0  ;;  %v170_v56 = vmax.f32 %v168_v54, 0.0  ;;  %v537_v53 = vrot.slane %v448_v52, %v2171_v42  ;;  %v1777_v54 = vld [vmem:[%s2369_s3 + $0x8] sm:$0x7] }
 0x11f   :  { %1972 = vmatprep.subr.bf16.mxu1 %v1971_v51 }
 0x120   :  { %1865 = vmatprep.mubr.msk.f32.mxu1 %vm43_vm0, %v169_v55  ;;  %619 = vrot.lane.b32.xlu0 %v537_v53, %s2107_s23  ;;  %v315_v55 = vrot.slane %v1777_v54, %v2161_v10 }
 0x121   :  { %1866 = vmatmul.mubr.msk.f32.vlgmr.msra.gmra.mrb[0].mxu1 %vm43_vm0, %v170_v56 }
 0x122   :  { %1974 = vmatpush3.bf16.msra.mxu1 %v1971_v51 }
 0x123   :  { %1978 = vmatprep.subr.bf16.mxu1 %v2104_v60 }
 0x1f4   :  { %v1867_v63 = vpop.f32.mrb[0].mxu1 }
 0x1f5   :  { %v258_v0 = vadd.f32 %v1867_v63, %v179_v62  ;;  %v252_v1 = vpop.f32.mrb[1].mxu1 }
 0x1f6   :  { %v253_v2 = vadd.f32 %v252_v1, %v179_v62 }
 0x1f7   :  { %v262_v3 = vsel %vm43_vm0, %v258_v0, 0.0  ;;  %v272_v4 = vmul.f32 %v258_v0, %v258_v0 }
 0x1f8   :  { %v261_v5 = vsel %vm43_vm0, %v253_v2, 0.0  ;;  %v271_v6 = vmul.f32 %v253_v2, %v253_v2 }
 0x1f9   :  { %v274_v7 = vsel %vm43_vm0, %v272_v4, 0.0  ;;  %v263_v9 = vadd.f32 %v262_v3, %v261_v5 }
 0x1fa   :  { %v273_v11 = vsel %vm43_vm0, %v271_v6, 0.0 }
 0x1fb   :  { %v264_v12 = vrot.slane %v263_v9, 4  ;;  %v275_v13 = vadd.f32 %v274_v7, %v273_v11 }
 0x1fd   :  { %v265_v14 = vadd.f32 %v264_v12, %v263_v9  ;;  %v276_v15 = vrot.slane %v275_v13, 4 }
 0x1ff   :  { %v266_v16 = vrot.slane %v265_v14, 2  ;;  %v277_v17 = vadd.f32 %v276_v15, %v275_v13 }
 0x201   :  { %v267_v18 = vadd.f32 %v266_v16, %v265_v14  ;;  %v278_v19 = vrot.slane %v277_v17, 2 }
 0x203   :  { %v268_v20 = vrot.slane %v267_v18, 1  ;;  %v279_v21 = vadd.f32 %v278_v19, %v277_v17 }
 0x205   :  { %v269_v22 = vadd.f32 %v268_v20, %v267_v18  ;;  %v280_v23 = vrot.slane %v279_v21, 1 }
 0x207   :  { %v270_v24 = vmul.f32 0.0625, %v269_v22  ;;  %v281_v25 = vadd.f32 %v280_v23, %v279_v21 }
 0x209   :  { %v282_v26 = vmul.f32 0.0625, %v281_v25  ;;  %v283_v27 = vmul.f32 %v270_v24, %v270_v24 }
 0x20b   :  { %v284_v28 = vsub.f32 %v282_v26, %v283_v27 }
 0x20d   :  { %v285_v29 = vadd.f32 1e-05, %v284_v28 }
 0x20f   :  { %2019 = vrsqrt.f32 %v285_v29 }
 0x219   :  { %v2020_v30 = vpop.eup %2019 }
 0x21a   :  { %v287_v31 = vmul.f32 %v2020_v30, %v1774_v61 }
 0x21c   :  { %v288_v32 = vmul.f32 %v287_v31, %v270_v24  ;;  %v296_v33 = vrot.slane %v287_v31, %v2171_v42 }
 0x21e   :  { %v290_v34 = vrot.slane %v288_v32, 7  ;;  %v297_v35 = vmul.f32 %v296_v33, %v253_v2  ;;  %v298_v36 = vmul.f32 %v296_v33, %v258_v0  ;;  %v2230_v33 = vpop.permute.xlu0 %619 }
 0x220   :  { %v292_v37 = vsub.f32 %v1774_v61, %v290_v34 }
 0x222   :  { %v302_v38 = vrot.slane %v292_v37, %v2174_v50 }
 0x224   :  { %v303_v41 = vadd.f32 %v302_v38, %v297_v35  ;;  %v304_v43 = vadd.f32 %v302_v38, %v298_v36 }
 0x226   :  { %v306_v44 = vmax.f32 %v304_v43, 0.0  ;;  %v305_v45 = vmax.f32 %v303_v41, 0.0  ;;  %v452_v41 = vrot.slane %v448_v52, %v2161_v10 }
 0x228   :  { %1872 = vmatprep.mubr.msk.f32.mxu0 %vm43_vm0, %v305_v45 }
 0x229   :  { %1873 = vmatmul.mubr.msk.f32.vlgmr.msra.gmra.mrb[2].mxu0 %vm43_vm0, %v306_v44 }
 0x22a   :  { %1977 = vmatpush3.bf16.msra.mxu0 %v2196_v46  ;;  %1886 = vmatprep.mubr.msk.f32.mxu0 %vm2105_vm1, %v2106_v47 }
 0x22b   :  { %1981 = vmatprep.subr.bf16.mxu0 %v2104_v60 }
 0x22d   :  { %1887 = vmatmul.mubr.f32.vlgmr.msra.gmra.mrb[4].mxu0 %v2106_v47 }
 0x22e   :  { %1983 = vmatpush3.bf16.msra.mxu0 %v2196_v46  ;;  %1900 = vmatprep.mubr.msk.f32.mxu0 %vm2105_vm1, %v2106_v47 }
 0x22f   :  { %1987 = vmatprep.subr.bf16.mxu0 %v2104_v60 }
 0x2fc   :  { %v1874_v56 = vpop.f32.mrb[2].mxu0 }
 0x2fd   :  { %v394_v57 = vadd.f32 %v1874_v56, %v315_v55  ;;  %v388_v58 = vpop.f32.mrb[3].mxu0 }
 0x2fe   :  { %v389_v59 = vadd.f32 %v388_v58, %v315_v55 }
 0x2ff   :  { %v398_v61 = vsel %vm43_vm0, %v394_v57, 0.0  ;;  %v408_v62 = vmul.f32 %v394_v57, %v394_v57 }
 0x300   :  { %v397_v63 = vsel %vm43_vm0, %v389_v59, 0.0  ;;  %v407_v0 = vmul.f32 %v389_v59, %v389_v59  ;;  %v607_v1 = vpop.f32.mrb[4].mxu0 }
 0x301   :  { %v410_v2 = vsel %vm43_vm0, %v408_v62, 0.0  ;;  %v399_v3 = vadd.f32 %v398_v61, %v397_v63  ;;  %v1888_v4 = vpop.f32.mrb[5].mxu0  ;;  %v622_v34 = vadd.f32 %v2230_v33, %v607_v1 }
 0x302   :  { %v409_v5 = vsel %vm43_vm0, %v407_v0, 0.0 }
 0x303   :  { %v400_v6 = vrot.slane %v399_v3, 4  ;;  %v411_v7 = vadd.f32 %v410_v2, %v409_v5  ;;  %624 = vrot.lane.b32.xlu0 %v622_v34, %s2108_s2 }
 0x305   :  { %v401_v9 = vadd.f32 %v400_v6, %v399_v3  ;;  %v412_v11 = vrot.slane %v411_v7, 4 }
 0x307   :  { %v402_v12 = vrot.slane %v401_v9, 2  ;;  %v413_v13 = vadd.f32 %v412_v11, %v411_v7 }
 0x309   :  { %v403_v14 = vadd.f32 %v402_v12, %v401_v9  ;;  %v414_v15 = vrot.slane %v413_v13, 2 }
 0x30b   :  { %v404_v16 = vrot.slane %v403_v14, 1  ;;  %v415_v17 = vadd.f32 %v414_v15, %v413_v13 }
 0x30d   :  { %v405_v18 = vadd.f32 %v404_v16, %v403_v14  ;;  %v416_v19 = vrot.slane %v415_v17, 1 }
 0x30f   :  { %v406_v20 = vmul.f32 0.0625, %v405_v18  ;;  %v417_v21 = vadd.f32 %v416_v19, %v415_v17 }
 0x311   :  { %v418_v22 = vmul.f32 0.0625, %v417_v21  ;;  %v419_v23 = vmul.f32 %v406_v20, %v406_v20 }
 0x313   :  { %v420_v24 = vsub.f32 %v418_v22, %v419_v23 }
 0x315   :  { %v421_v25 = vadd.f32 1e-05, %v420_v24 }
 0x317   :  { %2021 = vrsqrt.f32 %v421_v25 }
 0x321   :  { %v2022_v26 = vpop.eup %2021 }
 0x322   :  { %v423_v27 = vmul.f32 %v2022_v26, %v1777_v54 }
 0x324   :  { %v424_v28 = vmul.f32 %v423_v27, %v406_v20  ;;  %v432_v29 = vrot.slane %v423_v27, %v2171_v42 }
 0x326   :  { %v426_v30 = vrot.slane %v424_v28, 7  ;;  %v433_v31 = vmul.f32 %v432_v29, %v389_v59  ;;  %v434_v32 = vmul.f32 %v432_v29, %v394_v57 }
 0x328   :  { %v428_v35 = vsub.f32 %v1777_v54, %v426_v30 }
 0x32a   :  { %v438_v36 = vrot.slane %v428_v35, %v2174_v50 }
 0x32c   :  { %v439_v37 = vadd.f32 %v438_v36, %v433_v31  ;;  %v440_v38 = vadd.f32 %v438_v36, %v434_v32 }
 0x32e   :  { %v442_v39 = vmax.f32 %v440_v38, 0.0  ;;  %v441_v40 = vmax.f32 %v439_v37, 0.0 }
 0x330   :  { %1879 = vmatprep.mubr.msk.f32.mxu1 %vm43_vm0, %v441_v40 }
 0x331   :  { %1880 = vmatmul.mubr.msk.f32.vlgmr.msra.gmra.mrb[2].mxu1 %vm43_vm0, %v442_v39 }
 0x332   :  { %1980 = vmatpush3.bf16.msra.mxu1 %v2196_v46  ;;  %1893 = vmatprep.mubr.msk.f32.mxu1 %vm2105_vm1, %v2106_v47 }
 0x333   :  { %1984 = vmatprep.subr.bf16.mxu1 %v2104_v60 }
 0x375   :  { %v625_v55 = vpop.permute.xlu0 %624 }
 0x404   :  { %v1881_v43 = vpop.f32.mrb[2].mxu1 }
 0x405   :  { %v2242_v44 = vadd.f32 %v1881_v43, %v452_v41  ;;  %v525_v45 = vpop.f32.mrb[3].mxu1 }
 0x406   :  { %v2244_v48 = vadd.f32 %v525_v45, %v452_v41 }
 0x408   :  { %v611_v49 = vadd.f32 %v607_v1, %v2244_v48 }
 0x40a   :  { %v1784_v51 = vmul.f32 -1.442695, %v611_v49 }
 0x40c   :  { %2023 = vpow2.f32 %v1784_v51 }
 0x416   :  { %v2024_v53 = vpop.eup %2023 }
 0x417   :  { %v615_v54 = vadd.f32 1.0, %v2024_v53 }
 0x419   :  { %2025 = vrcp.f32 %v615_v54 }
 0x423   :  { %v2026_v56 = vpop.eup %2025 }
 0x424   :  { %v627_v57 = vmul.f32 %v2026_v56, %v625_v55  ;;  %v634_v61 = vsub.f32 1.0, %v2026_v56  ;;  %v640_v63 = vmul.f32 0.0, %v2026_v56 }
 0x426   :  { %629 = vrot.lane.b32.xlu1 %v627_v57, %s2107_s23 }
 0x498   :  { %v630_v58 = vpop.permute.xlu1 %629 }
 0x499   :  { %v632_v52 = vadd.f32 %v630_v58, %v2244_v48 }
 0x49b   :  { %2027 = vtanh.f32 %v632_v52 }
 0x4a5   :  { %v2028_v59 = vpop.eup %2027 }
 0x4a6   :  { %636 = vrot.lane.b32.xlu1 %v2028_v59, %s2109_s4 }
 0x518   :  { %v637_v62 = vpop.permute.xlu1 %636 }
 0x519   :  { %v639_v0 = vmul.f32 %v637_v62, %v634_v61 }
 0x51b   :  { %v641_v1 = vadd.f32 %v640_v63, %v639_v0 }
 0x51d   :  { %643 = vrot.lane.b32.xlu0 %v641_v1, %s2109_s4  ;;  %v746_v20 = vrot.slane %v641_v1, 6 }
 0x58f   :  { %v644_v2 = vpop.permute.xlu0 %643 }
 0x590   :  { %1894 = vmatmul.mubr.msk.f32.vlgmr.msra.gmra.mrb[4].mxu1 %vm43_vm0, %v644_v2 }
 0x591   :  { %1986 = vmatpush3.bf16.msra.mxu1 %v2196_v46  ;;  %1907 = vmatprep.mubr.msk.f32.mxu1 %vm2105_vm1, %v2106_v47 }
 0x592   :  { %1990 = vmatprep.subr.bf16.mxu1 %v2104_v60 }
 0x663   :  { %v713_v3 = vpop.f32.mrb[4].mxu1 }
 0x664   :  { %v727_v4 = vadd.f32 %v713_v3, %v2230_v33  ;;  %v1895_v5 = vpop.f32.mrb[5].mxu1  ;;  %v718_v7 = vrot.slane %v713_v3, 6 }
 0x666   :  { %v729_v6 = vrot.slane %v727_v4, 6  ;;  %v720_v9 = vadd.f32 %v718_v7, %v2244_v48 }
 0x668   :  { %730 = vrot.lane.b32.xlu1 %v729_v6, %s2108_s2  ;;  %v1786_v11 = vmul.f32 -1.442695, %v720_v9 }
 0x66a   :  { %2029 = vpow2.f32 %v1786_v11 }
 0x674   :  { %v2030_v12 = vpop.eup %2029 }
 0x675   :  { %v724_v13 = vadd.f32 1.0, %v2030_v12 }
 0x677   :  { %2031 = vrcp.f32 %v724_v13 }
 0x681   :  { %v2032_v14 = vpop.eup %2031 }
 0x682   :  { %v740_v21 = vsub.f32 1.0, %v2032_v14  ;;  %v748_v24 = vmul.f32 %v2032_v14, %v746_v20 }
 0x6da   :  { %v731_v15 = vpop.permute.xlu1 %730 }
 0x6db   :  { %v733_v16 = vmul.f32 %v2032_v14, %v731_v15 }
 0x6dd   :  { %735 = vrot.lane.b32.xlu0 %v733_v16, %s2107_s23 }
 0x74f   :  { %v736_v17 = vpop.permute.xlu0 %735 }
 0x750   :  { %v738_v18 = vadd.f32 %v736_v17, %v2244_v48 }
 0x752   :  { %2033 = vtanh.f32 %v738_v18 }
 0x75c   :  { %v2034_v19 = vpop.eup %2033 }
 0x75d   :  { %742 = vrot.lane.b32.xlu1 %v2034_v19, %s2109_s4 }
 0x7cf   :  { %v743_v22 = vpop.permute.xlu1 %742 }
 0x7d0   :  { %v745_v23 = vmul.f32 %v743_v22, %v740_v21 }
 0x7d2   :  { %v749_v25 = vadd.f32 %v748_v24, %v745_v23 }
 0x7d4   :  { %v751_v26 = vrot.slane %v749_v25, 2  ;;  %v855_v49 = vrot.slane %v749_v25, 6 }
 0x7d6   :  { %752 = vrot.lane.b32.xlu0 %v751_v26, %s2109_s4 }
 0x848   :  { %v753_v27 = vpop.permute.xlu0 %752 }
 0x849   :  { %1901 = vmatmul.mubr.msk.f32.vlgmr.msra.gmra.mrb[6].mxu0 %vm43_vm0, %v753_v27 }
 0x84a   :  { %1989 = vmatpush3.bf16.msra.mxu0 %v2196_v46  ;;  %1914 = vmatprep.mubr.msk.f32.mxu0 %vm2105_vm1, %v2106_v47 }
 0x84b   :  { %1993 = vmatprep.subr.bf16.mxu0 %v2104_v60 }
 0x91c   :  { %v822_v28 = vpop.f32.mrb[6].mxu0 }
 0x91d   :  { %v836_v29 = vadd.f32 %v822_v28, %v2230_v33  ;;  %v1902_v30 = vpop.f32.mrb[7].mxu0  ;;  %v827_v32 = vrot.slane %v822_v28, 4 }
 0x91f   :  { %v838_v31 = vrot.slane %v836_v29, 4  ;;  %v829_v34 = vadd.f32 %v827_v32, %v2244_v48 }
 0x921   :  { %839 = vrot.lane.b32.xlu1 %v838_v31, %s2108_s2  ;;  %v1788_v35 = vmul.f32 -1.442695, %v829_v34 }
 0x923   :  { %2035 = vpow2.f32 %v1788_v35 }
 0x92d   :  { %v2036_v36 = vpop.eup %2035 }
 0x92e   :  { %v833_v37 = vadd.f32 1.0, %v2036_v36 }
 0x930   :  { %2037 = vrcp.f32 %v833_v37 }
 0x93a   :  { %v2038_v38 = vpop.eup %2037 }
 0x93b   :  { %v849_v51 = vsub.f32 1.0, %v2038_v38  ;;  %v857_v54 = vmul.f32 %v2038_v38, %v855_v49 }
 0x993   :  { %v840_v39 = vpop.permute.xlu1 %839 }
 0x994   :  { %v842_v40 = vmul.f32 %v2038_v38, %v840_v39 }
 0x996   :  { %844 = vrot.lane.b32.xlu0 %v842_v40, %s2107_s23 }
 0xa08   :  { %v845_v41 = vpop.permute.xlu0 %844 }
 0xa09   :  { %v847_v43 = vadd.f32 %v845_v41, %v2244_v48 }
 0xa0b   :  { %2039 = vtanh.f32 %v847_v43 }
 0xa15   :  { %v2040_v45 = vpop.eup %2039 }
 0xa16   :  { %851 = vrot.lane.b32.xlu1 %v2040_v45, %s2109_s4 }
 0xa88   :  { %v852_v53 = vpop.permute.xlu1 %851 }
 0xa89   :  { %v854_v55 = vmul.f32 %v852_v53, %v849_v51 }
 0xa8b   :  { %v858_v56 = vadd.f32 %v857_v54, %v854_v55 }
 0xa8d   :  { %v860_v57 = vrot.slane %v858_v56, 4  ;;  %v964_v12 = vrot.slane %v858_v56, 6 }
 0xa8f   :  { %861 = vrot.lane.b32.xlu0 %v860_v57, %s2109_s4 }
 0xb01   :  { %v862_v58 = vpop.permute.xlu0 %861 }
 0xb02   :  { %1908 = vmatmul.mubr.msk.f32.vlgmr.msra.gmra.mrb[6].mxu1 %vm43_vm0, %v862_v58 }
 0xb03   :  { %1992 = vmatpush3.bf16.msra.mxu1 %v2196_v46  ;;  %1921 = vmatprep.mubr.msk.f32.mxu1 %vm2105_vm1, %v2106_v47 }
 0xb04   :  { %1996 = vmatprep.subr.bf16.mxu1 %v2104_v60 }
 0xbd5   :  { %v931_v52 = vpop.f32.mrb[6].mxu1 }
 0xbd6   :  { %v945_v59 = vadd.f32 %v931_v52, %v2230_v33  ;;  %v1909_v61 = vpop.f32.mrb[7].mxu1  ;;  %v936_v63 = vrot.slane %v931_v52, 2 }
 0xbd8   :  { %v947_v62 = vrot.slane %v945_v59, 2  ;;  %v938_v0 = vadd.f32 %v936_v63, %v2244_v48 }
 0xbda   :  { %948 = vrot.lane.b32.xlu1 %v947_v62, %s2108_s2  ;;  %v1790_v1 = vmul.f32 -1.442695, %v938_v0 }
 0xbdc   :  { %2041 = vpow2.f32 %v1790_v1 }
 0xbe6   :  { %v2042_v2 = vpop.eup %2041 }
 0xbe7   :  { %v942_v3 = vadd.f32 1.0, %v2042_v2 }
 0xbe9   :  { %2043 = vrcp.f32 %v942_v3 }
 0xbf3   :  { %v2044_v4 = vpop.eup %2043 }
 0xbf4   :  { %v958_v13 = vsub.f32 1.0, %v2044_v4  ;;  %v966_v15 = vmul.f32 %v2044_v4, %v964_v12 }
 0xc4c   :  { %v949_v5 = vpop.permute.xlu1 %948 }
 0xc4d   :  { %v951_v6 = vmul.f32 %v2044_v4, %v949_v5 }
 0xc4f   :  { %953 = vrot.lane.b32.xlu0 %v951_v6, %s2107_s23 }
 0xcc1   :  { %v954_v7 = vpop.permute.xlu0 %953 }
 0xcc2   :  { %v956_v9 = vadd.f32 %v954_v7, %v2244_v48 }
 0xcc4   :  { %2045 = vtanh.f32 %v956_v9 }
 0xcce   :  { %v2046_v11 = vpop.eup %2045 }
 0xccf   :  { %960 = vrot.lane.b32.xlu1 %v2046_v11, %s2109_s4 }
 0xd41   :  { %v961_v14 = vpop.permute.xlu1 %960 }
 0xd42   :  { %v963_v16 = vmul.f32 %v961_v14, %v958_v13 }
 0xd44   :  { %v967_v17 = vadd.f32 %v966_v15, %v963_v16 }
 0xd46   :  { %v969_v18 = vrot.slane %v967_v17, 6 }
 0xd48   :  { %970 = vrot.lane.b32.xlu0 %v969_v18, %s2109_s4 }
 0xdba   :  { %v971_v19 = vpop.permute.xlu0 %970 }
 0xdbb   :  { %1915 = vmatmul.mubr.msk.f32.vlgmr.msra.gmra.mrb[8].mxu0 %vm43_vm0, %v971_v19 }
 0xdbc   :  { %1995 = vmatpush3.bf16.msra.mxu0 %v2196_v46  ;;  %1928 = vmatprep.mubr.msk.f32.mxu0 %vm2105_vm1, %v2106_v47 }
 0xdbd   :  { %1999 = vmatprep.subr.bf16.mxu0 %v2104_v60 }
 0xe8e   :  { %v1040_v48 = vpop.f32.mrb[8].mxu0 }
 0xe8f   :  { %v1051_v20 = vadd.f32 %v1040_v48, %v2230_v33  ;;  %v1916_v21 = vpop.f32.mrb[9].mxu0  ;;  %v1044_v22 = vadd.f32 %v1040_v48, %v2242_v44 }
 0xe91   :  { %1053 = vrot.lane.b32.xlu1 %v1051_v20, %s2108_s2  ;;  %v1792_v23 = vmul.f32 -1.442695, %v1044_v22 }
 0xe93   :  { %2047 = vpow2.f32 %v1792_v23 }
 0xe9d   :  { %v2048_v24 = vpop.eup %2047 }
 0xe9e   :  { %v1048_v25 = vadd.f32 1.0, %v2048_v24 }
 0xea0   :  { %2049 = vrcp.f32 %v1048_v25 }
 0xeaa   :  { %v2050_v26 = vpop.eup %2049 }
 0xeab   :  { %v1063_v32 = vsub.f32 1.0, %v2050_v26  ;;  %v1070_v35 = vmul.f32 %v2050_v26, %v969_v18 }
 0xf03   :  { %v1054_v27 = vpop.permute.xlu1 %1053 }
 0xf04   :  { %v1056_v28 = vmul.f32 %v2050_v26, %v1054_v27 }
 0xf06   :  { %1058 = vrot.lane.b32.xlu0 %v1056_v28, %s2107_s23 }
 0xf78   :  { %v1059_v29 = vpop.permute.xlu0 %1058 }
 0xf79   :  { %v1061_v30 = vadd.f32 %v1059_v29, %v2242_v44 }
 0xf7b   :  { %2051 = vtanh.f32 %v1061_v30 }
 0xf85   :  { %v2052_v31 = vpop.eup %2051 }
 0xf86   :  { %1065 = vrot.lane.b32.xlu1 %v2052_v31, %s2109_s4 }
 0xff8   :  { %v1066_v34 = vpop.permute.xlu1 %1065 }
 0xff9   :  { %v1068_v36 = vmul.f32 %v1066_v34, %v1063_v32 }
 0xffb   :  { %v1071_v37 = vadd.f32 %v1070_v35, %v1068_v36 }
 0xffd   :  { %1073 = vrot.lane.b32.xlu0 %v1071_v37, %s2109_s4  ;;  %v1176_v59 = vrot.slane %v1071_v37, 6 }
0x106f   :  { %v1074_v38 = vpop.permute.xlu0 %1073 }
0x1070   :  { %1922 = vmatmul.mubr.msk.f32.vlgmr.msra.gmra.mrb[8].mxu1 %vm43_vm0, %v1074_v38 }
0x1071   :  { %1998 = vmatpush3.bf16.msra.mxu1 %v2196_v46  ;;  %1935 = vmatprep.mubr.msk.f32.mxu1 %vm2105_vm1, %v2106_v47 }
0x1072   :  { %2002 = vmatprep.subr.bf16.mxu1 %v2104_v60 }
0x1143   :  { %v1143_v39 = vpop.f32.mrb[8].mxu1 }
0x1144   :  { %v1157_v40 = vadd.f32 %v1143_v39, %v2230_v33  ;;  %v1923_v41 = vpop.f32.mrb[9].mxu1  ;;  %v1148_v45 = vrot.slane %v1143_v39, 6 }
0x1146   :  { %v1159_v43 = vrot.slane %v1157_v40, 6  ;;  %v1150_v49 = vadd.f32 %v1148_v45, %v2242_v44  ;;  %v1400_v45 = vld [vmem:[#allocation2 + $0x38] sm:$0xff] }
0x1148   :  { %1160 = vrot.lane.b32.xlu1 %v1159_v43, %s2108_s2  ;;  %v1794_v51 = vmul.f32 -1.442695, %v1150_v49  ;;  %v1399_v43 = vld [vmem:[#allocation2 + $0x30] sm:$0xff] }
0x1149   :  { %v2000_v49 = vpack.c.bf16 %v1400_v45, %v1399_v43 }
0x114a   :  { %2053 = vpow2.f32 %v1794_v51 }
0x1154   :  { %v2054_v53 = vpop.eup %2053 }
0x1155   :  { %v1154_v54 = vadd.f32 1.0, %v2054_v53 }
0x1157   :  { %2055 = vrcp.f32 %v1154_v54 }
0x1161   :  { %v2056_v46 = vpop.eup %2055 }
0x1162   :  { %v1170_v61 = vsub.f32 1.0, %v2056_v46  ;;  %v1178_v0 = vmul.f32 %v2056_v46, %v1176_v59 }
0x11ba   :  { %v1161_v55 = vpop.permute.xlu1 %1160 }
0x11bb   :  { %v1163_v56 = vmul.f32 %v2056_v46, %v1161_v55 }
0x11bd   :  { %1165 = vrot.lane.b32.xlu0 %v1163_v56, %s2107_s23 }
0x122f   :  { %v1166_v57 = vpop.permute.xlu0 %1165 }
0x1230   :  { %v1168_v58 = vadd.f32 %v1166_v57, %v2242_v44 }
0x1232   :  { %2057 = vtanh.f32 %v1168_v58 }
0x123c   :  { %v2058_v52 = vpop.eup %2057 }
0x123d   :  { %1172 = vrot.lane.b32.xlu1 %v2058_v52, %s2109_s4  ;;  %v1523_v52 = vld [vmem:[#allocation2 + $0x40] sm:$0xff] }
0x12af   :  { %v1173_v62 = vpop.permute.xlu1 %1172 }
0x12b0   :  { %v1175_v63 = vmul.f32 %v1173_v62, %v1170_v61  ;;  %v1799_v61 = vld [vmem:[%s2369_s3 + $0xc] sm:$0x7] }
0x12b1   :  { %v1406_v62 = vrot.slane %v1799_v61, %v2161_v10 }
0x12b2   :  { %v1179_v1 = vadd.f32 %v1178_v0, %v1175_v63 }
0x12b4   :  { %v1181_v2 = vrot.slane %v1179_v1, 2  ;;  %v1285_v20 = vrot.slane %v1179_v1, 6 }
0x12b6   :  { %1182 = vrot.lane.b32.xlu0 %v1181_v2, %s2109_s4 }
0x1328   :  { %v1183_v3 = vpop.permute.xlu0 %1182 }
0x1329   :  { %1929 = vmatmul.mubr.msk.f32.vlgmr.msra.gmra.mrb[10].mxu0 %vm43_vm0, %v1183_v3 }
0x132a   :  { %1942 = vmatprep.mubr.msk.f32.mxu0 %vm2105_vm1, %v2106_v47  ;;  %2001 = vmatpush3.bf16.msra.mxu0 %v2000_v49 }
0x132b   :  { %2005 = vmatprep.subr.bf16.mxu0 %v2104_v60  ;;  %v1524_v60 = vld [vmem:[#allocation2 + $0x48] sm:$0xff] }
0x132c   :  { %v2003_v59 = vpack.c.bf16 %v1524_v60, %v1523_v52 }
0x13fc   :  { %v1252_v4 = vpop.f32.mrb[10].mxu0 }
0x13fd   :  { %v1266_v5 = vadd.f32 %v1252_v4, %v2230_v33  ;;  %v1930_v6 = vpop.f32.mrb[11].mxu0  ;;  %v1257_v9 = vrot.slane %v1252_v4, 4 }
0x13ff   :  { %v1268_v7 = vrot.slane %v1266_v5, 4  ;;  %v1259_v11 = vadd.f32 %v1257_v9, %v2242_v44 }
0x1401   :  { %1269 = vrot.lane.b32.xlu1 %v1268_v7, %s2108_s2  ;;  %v1796_v12 = vmul.f32 -1.442695, %v1259_v11 }
0x1403   :  { %2059 = vpow2.f32 %v1796_v12 }
0x140d   :  { %v2060_v13 = vpop.eup %2059 }
0x140e   :  { %v1263_v14 = vadd.f32 1.0, %v2060_v13 }
0x1410   :  { %2061 = vrcp.f32 %v1263_v14 }
0x141a   :  { %v2062_v15 = vpop.eup %2061 }
0x141b   :  { %v1279_v21 = vsub.f32 1.0, %v2062_v15  ;;  %v1287_v23 = vmul.f32 %v2062_v15, %v1285_v20 }
0x1473   :  { %v1270_v16 = vpop.permute.xlu1 %1269 }
0x1474   :  { %v1272_v17 = vmul.f32 %v2062_v15, %v1270_v16 }
0x1476   :  { %1274 = vrot.lane.b32.xlu0 %v1272_v17, %s2107_s23 }
0x14e8   :  { %v1275_v18 = vpop.permute.xlu0 %1274 }
0x14e9   :  { %v1277_v19 = vadd.f32 %v1275_v18, %v2242_v44 }
0x14eb   :  { %2063 = vtanh.f32 %v1277_v19 }
0x14f5   :  { %v2064_v48 = vpop.eup %2063 }
0x14f6   :  { %1281 = vrot.lane.b32.xlu1 %v2064_v48, %s2109_s4 }
0x1568   :  { %v1282_v22 = vpop.permute.xlu1 %1281 }
0x1569   :  { %v1284_v24 = vmul.f32 %v1282_v22, %v1279_v21 }
0x156b   :  { %v1288_v25 = vadd.f32 %v1287_v23, %v1284_v24 }
0x156d   :  { %v1290_v26 = vrot.slane %v1288_v25, 4  ;;  %v1394_v53 = vrot.slane %v1288_v25, 6 }
0x156f   :  { %1291 = vrot.lane.b32.xlu0 %v1290_v26, %s2109_s4 }
0x15e1   :  { %v1292_v27 = vpop.permute.xlu0 %1291 }
0x15e2   :  { %1936 = vmatmul.mubr.msk.f32.vlgmr.msra.gmra.mrb[10].mxu1 %vm43_vm0, %v1292_v27 }
0x15e3   :  { %1949 = vmatprep.mubr.msk.f32.mxu1 %vm2105_vm1, %v2106_v47  ;;  %2004 = vmatpush3.bf16.msra.mxu1 %v2003_v59 }
0x16b5   :  { %v1361_v28 = vpop.f32.mrb[10].mxu1 }
0x16b6   :  { %v1375_v29 = vadd.f32 %v1361_v28, %v2230_v33  ;;  %v1937_v30 = vpop.f32.mrb[11].mxu1  ;;  %v1366_v32 = vrot.slane %v1361_v28, 2 }
0x16b8   :  { %v1377_v31 = vrot.slane %v1375_v29, 2  ;;  %v1368_v34 = vadd.f32 %v1366_v32, %v2242_v44  ;;  %v1643_v32 = vld [vmem:[#allocation2 + $0x50] sm:$0xff] }
0x16ba   :  { %1378 = vrot.lane.b32.xlu1 %v1377_v31, %s2108_s2  ;;  %v1798_v35 = vmul.f32 -1.442695, %v1368_v34  ;;  %v1644_v34 = vld [vmem:[#allocation2 + $0x58] sm:$0xff] }
0x16bc   :  { %2065 = vpow2.f32 %v1798_v35  ;;  %v2006_v35 = vpack.c.bf16 %v1644_v34, %v1643_v32 }
0x16c6   :  { %v2066_v36 = vpop.eup %2065 }
0x16c7   :  { %v1372_v37 = vadd.f32 1.0, %v2066_v36  ;;  %v1801_v36 = vld [vmem:[%s2369_s3 + $0x10] sm:$0x7] }
0x16c9   :  { %2067 = vrcp.f32 %v1372_v37  ;;  %v1530_v37 = vrot.slane %v1801_v36, %v2161_v10 }
0x16d3   :  { %v2068_v38 = vpop.eup %2067 }
0x16d4   :  { %v1388_v54 = vsub.f32 1.0, %v2068_v38  ;;  %v1396_v55 = vmul.f32 %v2068_v38, %v1394_v53 }
0x172c   :  { %v1379_v39 = vpop.permute.xlu1 %1378 }
0x172d   :  { %v1381_v40 = vmul.f32 %v2068_v38, %v1379_v39 }
0x172f   :  { %1383 = vrot.lane.b32.xlu0 %v1381_v40, %s2107_s23 }
0x17a1   :  { %v1384_v41 = vpop.permute.xlu0 %1383 }
0x17a2   :  { %v1386_v33 = vadd.f32 %v1384_v41, %v2242_v44 }
0x17a4   :  { %2069 = vtanh.f32 %v1386_v33 }
0x17ae   :  { %v2070_v51 = vpop.eup %2069 }
0x17af   :  { %1390 = vrot.lane.b32.xlu1 %v2070_v51, %s2109_s4 }
0x1821   :  { %v1391_v46 = vpop.permute.xlu1 %1390 }
0x1822   :  { %v1393_v56 = vmul.f32 %v1391_v46, %v1388_v54 }
0x1824   :  { %v1397_v57 = vadd.f32 %v1396_v55, %v1393_v56 }
0x1826   :  { %v1408_v58 = vrot.slane %v1397_v57, 6 }
0x1828   :  { %1409 = vrot.lane.b32.xlu0 %v1408_v58, %s2109_s4 }
0x189a   :  { %v1410_v44 = vpop.permute.xlu0 %1409 }
0x189b   :  { %1943 = vmatmul.mubr.msk.f32.vlgmr.msra.gmra.mrb[12].mxu0 %vm43_vm0, %v1410_v44 }
0x189c   :  { %1956 = vmatprep.mubr.msk.f32.mxu0 %vm2105_vm1, %v2106_v47  ;;  %2007 = vmatpush3.bf16.msra.mxu0 %v2006_v35 }
0x196e   :  { %v1479_v63 = vpop.f32.mrb[12].mxu0 }
0x196f   :  { %v1480_v0 = vadd.f32 %v1479_v63, %v1406_v62  ;;  %v1944_v1 = vpop.f32.mrb[13].mxu0 }
0x1971   :  { %v1484_v2 = vsel %vm1483_vm2, %v1480_v0, 0.0  ;;  %v1492_v3 = vmul.f32 %v1480_v0, %v1480_v0 }
0x1972   :  { %v1485_v4 = vrot.slane %v1484_v2, 4 }
0x1973   :  { %v1493_v47 = vsel %vm1483_vm2, %v1492_v3, 0.0 }
0x1974   :  { %v1486_v5 = vadd.f32 %v1485_v4, %v1484_v2  ;;  %v1494_v6 = vrot.slane %v1493_v47, 4 }
0x1976   :  { %v1487_v7 = vrot.slane %v1486_v5, 2  ;;  %v1495_v9 = vadd.f32 %v1494_v6, %v1493_v47 }
0x1978   :  { %v1488_v11 = vadd.f32 %v1487_v7, %v1486_v5  ;;  %v1496_v12 = vrot.slane %v1495_v9, 2 }
0x197a   :  { %v1489_v13 = vrot.slane %v1488_v11, 1  ;;  %v1497_v14 = vadd.f32 %v1496_v12, %v1495_v9 }
0x197c   :  { %v1490_v15 = vadd.f32 %v1489_v13, %v1488_v11  ;;  %v1498_v16 = vrot.slane %v1497_v14, 1  ;;  %v1803_v11 = vld [vmem:[%s2369_s3 + $0x14] sm:$0x7] }
0x197d   :  { %v1650_v12 = vrot.slane %v1803_v11, %v2161_v10 }
0x197e   :  { %v1491_v17 = vmul.f32 0.5, %v1490_v15  ;;  %v1499_v18 = vadd.f32 %v1498_v16, %v1497_v14 }
0x1980   :  { %v1500_v19 = vmul.f32 0.5, %v1499_v18  ;;  %v1501_v48 = vmul.f32 %v1491_v17, %v1491_v17 }
0x1982   :  { %v1502_v20 = vsub.f32 %v1500_v19, %v1501_v48 }
0x1984   :  { %v1503_v21 = vadd.f32 1e-05, %v1502_v20 }
0x1986   :  { %2071 = vrsqrt.f32 %v1503_v21 }
0x1990   :  { %v2072_v22 = vpop.eup %2071 }
0x1991   :  { %v1505_v23 = vmul.f32 %v2072_v22, %v1799_v61 }
0x1993   :  { %v1506_v24 = vmul.f32 %v1505_v23, %v1491_v17  ;;  %v1514_v26 = vrot.slane %v1505_v23, %v2171_v42 }
0x1995   :  { %v1508_v25 = vrot.slane %v1506_v24, 7  ;;  %v1515_v28 = vmul.f32 %v1514_v26, %v1480_v0 }
0x1997   :  { %v1510_v27 = vsub.f32 %v1799_v61, %v1508_v25 }
0x1999   :  { %v1519_v29 = vrot.slane %v1510_v27, %v2174_v50 }
0x199b   :  { %v1520_v30 = vadd.f32 %v1519_v29, %v1515_v28 }
0x199d   :  { %v1521_v31 = vmax.f32 %v1520_v30, 0.0 }
0x199f   :  { %1950 = vmatmul.mubr.msk.f32.vlgmr.msra.gmra.mrb[12].mxu1 %vm43_vm0, %v1521_v31 }
0x1a72   :  { %v1600_v38 = vpop.f32.mrb[12].mxu1 }
0x1a73   :  { %v1601_v39 = vadd.f32 %v1600_v38, %v1530_v37  ;;  %v1951_v40 = vpop.f32.mrb[13].mxu1 }
0x1a75   :  { %v1604_v41 = vsel %vm1483_vm2, %v1601_v39, 0.0  ;;  %v1612_v33 = vmul.f32 %v1601_v39, %v1601_v39 }
0x1a76   :  { %v1605_v43 = vrot.slane %v1604_v41, 4 }
0x1a77   :  { %v1613_v45 = vsel %vm1483_vm2, %v1612_v33, 0.0 }
0x1a78   :  { %v1606_v49 = vadd.f32 %v1605_v43, %v1604_v41  ;;  %v1614_v51 = vrot.slane %v1613_v45, 4  ;;  %v1762_v41 = vand.u32 127, %v39_v8 }
0x1a7a   :  { %v1607_v53 = vrot.slane %v1606_v49, 2  ;;  %v1615_v54 = vadd.f32 %v1614_v51, %v1613_v45  ;;  %vm1763_vm3 = vcmp.eq.s32.totalorder %v1762_v41, 1 }
0x1a7c   :  { %v1608_v46 = vadd.f32 %v1607_v53, %v1606_v49  ;;  %v1616_v55 = vrot.slane %v1615_v54, 2 }
0x1a7e   :  { %v1609_v56 = vrot.slane %v1608_v46, 1  ;;  %v1617_v57 = vadd.f32 %v1616_v55, %v1615_v54 }
0x1a80   :  { %v1610_v58 = vadd.f32 %v1609_v56, %v1608_v46  ;;  %v1618_v44 = vrot.slane %v1617_v57, 1 }
0x1a82   :  { %v1611_v52 = vmul.f32 0.5, %v1610_v58  ;;  %v1619_v60 = vadd.f32 %v1618_v44, %v1617_v57 }
0x1a84   :  { %v1620_v59 = vmul.f32 0.5, %v1619_v60  ;;  %v1621_v61 = vmul.f32 %v1611_v52, %v1611_v52 }
0x1a86   :  { %v1622_v62 = vsub.f32 %v1620_v59, %v1621_v61 }
0x1a88   :  { %v1623_v63 = vadd.f32 1e-05, %v1622_v62 }
0x1a8a   :  { %2073 = vrsqrt.f32 %v1623_v63 }
0x1a94   :  { %v2074_v0 = vpop.eup %2073 }
0x1a95   :  { %v1625_v1 = vmul.f32 %v2074_v0, %v1801_v36 }
0x1a97   :  { %v1626_v2 = vmul.f32 %v1625_v1, %v1611_v52  ;;  %v1634_v4 = vrot.slane %v1625_v1, %v2171_v42 }
0x1a99   :  { %v1628_v3 = vrot.slane %v1626_v2, 7  ;;  %v1635_v5 = vmul.f32 %v1634_v4, %v1601_v39 }
0x1a9b   :  { %v1630_v47 = vsub.f32 %v1801_v36, %v1628_v3 }
0x1a9d   :  { %v1639_v6 = vrot.slane %v1630_v47, %v2174_v50 }
0x1a9f   :  { %v1640_v7 = vadd.f32 %v1639_v6, %v1635_v5 }
0x1aa1   :  { %v1641_v9 = vmax.f32 %v1640_v7, 0.0 }
0x1aa3   :  { %1957 = vmatmul.mubr.msk.f32.vlgmr.msra.gmra.mrb[14].mxu0 %vm43_vm0, %v1641_v9 }
0x1b76   :  { %v1720_v13 = vpop.f32.mrb[14].mxu0 }
0x1b77   :  { %v1721_v14 = vadd.f32 %v1720_v13, %v1650_v12  ;;  %v1958_v15 = vpop.f32.mrb[15].mxu0 }
0x1b79   :  { %v1724_v16 = vsel %vm1483_vm2, %v1721_v14, 0.0  ;;  %v1732_v17 = vmul.f32 %v1721_v14, %v1721_v14 }
0x1b7a   :  { %v1725_v18 = vrot.slane %v1724_v16, 4 }
0x1b7b   :  { %v1733_v19 = vsel %vm1483_vm2, %v1732_v17, 0.0 }
0x1b7c   :  { %v1726_v48 = vadd.f32 %v1725_v18, %v1724_v16  ;;  %v1734_v20 = vrot.slane %v1733_v19, 4 }
0x1b7e   :  { %v1727_v21 = vrot.slane %v1726_v48, 2  ;;  %v1735_v22 = vadd.f32 %v1734_v20, %v1733_v19 }
0x1b80   :  { %v1728_v23 = vadd.f32 %v1727_v21, %v1726_v48  ;;  %v1736_v24 = vrot.slane %v1735_v22, 2 }
0x1b82   :  { %v1729_v25 = vrot.slane %v1728_v23, 1  ;;  %v1737_v26 = vadd.f32 %v1736_v24, %v1735_v22 }
0x1b84   :  { %v1730_v27 = vadd.f32 %v1729_v25, %v1728_v23  ;;  %v1738_v28 = vrot.slane %v1737_v26, 1 }
0x1b86   :  { %v1731_v10 = vmul.f32 0.5, %v1730_v27  ;;  %v1739_v29 = vadd.f32 %v1738_v28, %v1737_v26 }
0x1b88   :  { %v1740_v30 = vmul.f32 0.5, %v1739_v29  ;;  %v1741_v31 = vmul.f32 %v1731_v10, %v1731_v10 }
0x1b8a   :  { %v1742_v32 = vsub.f32 %v1740_v30, %v1741_v31 }
0x1b8c   :  { %v1743_v34 = vadd.f32 1e-05, %v1742_v32 }
0x1b8e   :  { %2075 = vrsqrt.f32 %v1743_v34 }
0x1b98   :  { %v2076_v35 = vpop.eup %2075 }
0x1b99   :  { %v1745_v36 = vmul.f32 %v2076_v35, %v1803_v11 }
0x1b9b   :  { %v1746_v37 = vmul.f32 %v1745_v36, %v1731_v10  ;;  %v1754_v39 = vrot.slane %v1745_v36, %v2171_v42 }
0x1b9d   :  { %v1748_v38 = vrot.slane %v1746_v37, 7  ;;  %v1755_v33 = vmul.f32 %v1754_v39, %v1721_v14 }
0x1b9f   :  { %v1750_v40 = vsub.f32 %v1803_v11, %v1748_v38 }
0x1ba1   :  { %v1759_v43 = vrot.slane %v1750_v40, %v2174_v50 }
0x1ba3   :  { %v1760_v45 = vadd.f32 %v1759_v43, %v1755_v33 }
0x1ba5   :  { %v1764_v49 = vand.u32 2147483647, %v1760_v45 }
0x1ba7   :  { %v1765_v51 = vsel %vm1763_vm3, %v1764_v49, %v1760_v45 }
0x1ba8   :  { %1766 = vst.msk [vmem:[%s2371_s5] sm:$0x3] %vm1483_vm2, %v1765_v51 }
0x1ba9   :  { %1771 = vsyncpa [#allocation3], 1 }

</bundles_post_ra>
